<compile_context>
chip_gen: v5e
topology: v5e:2x2
jax: 0.10.0
libtpu: 0.0.40
codegen_flags: <defaults>
</compile_context>

<pallas_src>
import functools
import math

import jax
import jax.numpy as jnp
from jax import lax
from jax.experimental import pallas as pl
from jax.experimental.pallas import tpu as pltpu

NEG_INF = -100000.0   # matches the PyTorch module's NEG_INF
LN_EPS = 1e-5         # nn.LayerNorm default eps


def _round_up(x, m):
    return ((x + m - 1) // m) * m


# --------------------------------------------------------------------------- #
# Plain linear (no bias): fused QKV projection.
# --------------------------------------------------------------------------- #
def _linear_kernel(x_ref, w_ref, o_ref):
    o_ref[...] = jnp.dot(x_ref[...], w_ref[...],
                         preferred_element_type=jnp.float32).astype(o_ref.dtype)


def linear(x2d, w, *, tm=256):
    M, K = x2d.shape
    N = w.shape[1]
    tm = min(tm, _round_up(M, 8))
    return pl.pallas_call(
        _linear_kernel,
        out_shape=jax.ShapeDtypeStruct((M, N), x2d.dtype),
        grid_spec=pltpu.PrefetchScalarGridSpec(
            num_scalar_prefetch=0,
            grid=(pl.cdiv(M, tm),),
            in_specs=[
                pl.BlockSpec((tm, K), lambda i: (i, 0)),
                pl.BlockSpec((K, N), lambda i: (0, 0)),      # weight resident in VMEM
            ],
            out_specs=pl.BlockSpec((tm, N), lambda i: (i, 0)),
        ),
        compiler_params=pltpu.CompilerParams(dimension_semantics=("parallel",)),
    )(x2d, w)


# --------------------------------------------------------------------------- #
# Attention core: one grid step per batch element, all heads in-kernel.
# seq_len is scalar-prefetched into SMEM; the mask is built in-kernel.
# --------------------------------------------------------------------------- #
def _mha_kernel(seqlen_ref, q_ref, k_ref, v_ref, o_ref, *, scale):
    b = pl.program_id(0)
    length = seqlen_ref[b]

    q = q_ref[...].astype(jnp.float32)          # (H, S, kd)
    k = k_ref[...].astype(jnp.float32)          # (H, S, kd)
    v = v_ref[...]                              # (H, S, vd)

    # scores = (q @ k^T) * scale, batched over heads
    s = jnp.einsum('hqd,hkd->hqk', q, k,
                   preferred_element_type=jnp.float32) * scale

    rows = lax.broadcasted_iota(jnp.int32, s.shape, 1)
    cols = lax.broadcasted_iota(jnp.int32, s.shape, 2)
    valid = jnp.logical_and(rows < length, cols < length).astype(jnp.float32)
    # Same additive masking as torch: attention + (1 - mask) * NEG_INF
    s = s + (1.0 - valid) * NEG_INF

    s = s - jnp.max(s, axis=-1, keepdims=True)
    p = jnp.exp(s)
    p = p * pl.reciprocal(jnp.sum(p, axis=-1, keepdims=True), approx=True)

    o = jnp.einsum('hqk,hkd->hqd', p.astype(v.dtype), v,
                   preferred_element_type=jnp.float32)
    o_ref[...] = o.astype(o_ref.dtype)


def multi_head_attention_core(q, k, v, seq_len, *, scale):
    B, H, S, kd = q.shape
    vd = v.shape[-1]
    return pl.pallas_call(
        functools.partial(_mha_kernel, scale=scale),
        out_shape=jax.ShapeDtypeStruct((B, H, S, vd), q.dtype),
        grid_spec=pltpu.PrefetchScalarGridSpec(
            num_scalar_prefetch=1,
            grid=(B,),
            in_specs=[
                pl.BlockSpec((None, H, S, kd), lambda b, sl: (b, 0, 0, 0)),
                pl.BlockSpec((None, H, S, kd), lambda b, sl: (b, 0, 0, 0)),
                pl.BlockSpec((None, H, S, vd), lambda b, sl: (b, 0, 0, 0)),
            ],
            out_specs=pl.BlockSpec((None, H, S, vd), lambda b, sl: (b, 0, 0, 0)),
        ),
        compiler_params=pltpu.CompilerParams(dimension_semantics=("parallel",)),
    )(seq_len.astype(jnp.int32), q, k, v)


# --------------------------------------------------------------------------- #
# Fused: attention output projection (w_o) + residual add + LayerNorm.
# --------------------------------------------------------------------------- #
def _proj_add_ln_kernel(ctx_ref, res_ref, wo_ref, g_ref, beta_ref, o_ref, *, eps):
    att = jnp.dot(ctx_ref[...], wo_ref[...], preferred_element_type=jnp.float32)
    x = att + res_ref[...].astype(jnp.float32)
    mu = jnp.mean(x, axis=-1, keepdims=True)
    xc = x - mu
    var = jnp.mean(xc * xc, axis=-1, keepdims=True)
    y = xc * lax.rsqrt(var + eps)
    o_ref[...] = (y * g_ref[...] + beta_ref[...]).astype(o_ref.dtype)


def attn_out_add_layernorm(ctx2d, res2d, w_o, gamma, beta, *, tm=256, eps=LN_EPS):
    M, Dv = ctx2d.shape
    D = w_o.shape[1]
    tm = min(tm, _round_up(M, 8))
    return pl.pallas_call(
        functools.partial(_proj_add_ln_kernel, eps=eps),
        out_shape=jax.ShapeDtypeStruct((M, D), ctx2d.dtype),
        grid_spec=pltpu.PrefetchScalarGridSpec(
            num_scalar_prefetch=0,
            grid=(pl.cdiv(M, tm),),
            in_specs=[
                pl.BlockSpec((tm, Dv), lambda i: (i, 0)),
                pl.BlockSpec((tm, D), lambda i: (i, 0)),
                pl.BlockSpec((Dv, D), lambda i: (0, 0)),      # w_o resident in VMEM
                pl.BlockSpec((1, D), lambda i: (0, 0)),
                pl.BlockSpec((1, D), lambda i: (0, 0)),
            ],
            out_specs=pl.BlockSpec((tm, D), lambda i: (i, 0)),
        ),
        compiler_params=pltpu.CompilerParams(dimension_semantics=("parallel",)),
    )(ctx2d, res2d, w_o, gamma.reshape(1, D), beta.reshape(1, D))


# --------------------------------------------------------------------------- #
# Fused: position-wise FFN (linear -> relu -> linear) + residual + LayerNorm.
# --------------------------------------------------------------------------- #
def _ffn_add_ln_kernel(x_ref, w1_ref, b1_ref, w2_ref, b2_ref, g_ref, beta_ref,
                       o_ref, *, eps):
    x = x_ref[...]
    h = jnp.dot(x, w1_ref[...], preferred_element_type=jnp.float32)
    h = jnp.maximum(h + b1_ref[...], 0.0)
    f = jnp.dot(h.astype(w2_ref.dtype), w2_ref[...],
                preferred_element_type=jnp.float32) + b2_ref[...]
    z = f + x.astype(jnp.float32)
    mu = jnp.mean(z, axis=-1, keepdims=True)
    zc = z - mu
    var = jnp.mean(zc * zc, axis=-1, keepdims=True)
    y = zc * lax.rsqrt(var + eps)
    o_ref[...] = (y * g_ref[...] + beta_ref[...]).astype(o_ref.dtype)


def ffn_add_layernorm(x2d, w1, b1, w2, b2, gamma, beta, *, tm=256, eps=LN_EPS):
    M, input_dim = x2d.shape
    inner_dim = w1.shape[1]
    out_dim = w2.shape[1]
    tm = min(tm, _round_up(M, 8))

    # VMEM estimate: double-buffered x/out tiles + resident (double-buffered)
    # weights + hidden tile + biases; raise the scoped limit only if needed.
    itemsize = jnp.dtype(x2d.dtype).itemsize
    vmem_est = (2 * tm * (input_dim + out_dim) * itemsize
                + 2 * (input_dim * inner_dim + inner_dim * out_dim) * itemsize
                + tm * inner_dim * 4
                + 2 * (inner_dim + 3 * out_dim) * itemsize)
    vmem_limit = None
    if vmem_est > (32 << 20):
        vmem_limit = min(vmem_est + (8 << 20), 100 << 20)

    return pl.pallas_call(
        functools.partial(_ffn_add_ln_kernel, eps=eps),
        out_shape=jax.ShapeDtypeStruct((M, out_dim), x2d.dtype),
        grid_spec=pltpu.PrefetchScalarGridSpec(
            num_scalar_prefetch=0,
            grid=(pl.cdiv(M, tm),),
            in_specs=[
                pl.BlockSpec((tm, input_dim), lambda i: (i, 0)),
                pl.BlockSpec((input_dim, inner_dim), lambda i: (0, 0)),
                pl.BlockSpec((1, inner_dim), lambda i: (0, 0)),
                pl.BlockSpec((inner_dim, out_dim), lambda i: (0, 0)),
                pl.BlockSpec((1, out_dim), lambda i: (0, 0)),
                pl.BlockSpec((1, out_dim), lambda i: (0, 0)),
                pl.BlockSpec((1, out_dim), lambda i: (0, 0)),
            ],
            out_specs=pl.BlockSpec((tm, out_dim), lambda i: (i, 0)),
        ),
        compiler_params=pltpu.CompilerParams(
            dimension_semantics=("parallel",),
            vmem_limit_bytes=vmem_limit),
    )(x2d, w1, b1.reshape(1, inner_dim), w2, b2.reshape(1, out_dim),
      gamma.reshape(1, out_dim), beta.reshape(1, out_dim))


# --------------------------------------------------------------------------- #
# Full encoder forward (wrapper composes the Pallas kernels).
# --------------------------------------------------------------------------- #
@functools.partial(jax.jit, static_argnames=("num_heads",))
def transformer_encoder(x, seq_len, params, *, num_heads):
    B, S, D = x.shape
    H = num_heads
    kd = D // H
    x2d = x.reshape(B * S, D)

    # Fused QKV projection (single matmul), then split into heads.
    qkv = linear(x2d, params["w_qkv"])                              # (B*S, 3*H*kd)
    qkv = qkv.reshape(B, S, 3, H, kd).transpose(2, 0, 3, 1, 4)      # (3, B, H, S, kd)
    q, k, v = qkv[0], qkv[1], qkv[2]

    ctx = multi_head_attention_core(q, k, v, seq_len, scale=1.0 / math.sqrt(kd))
    ctx2d = ctx.transpose(0, 2, 1, 3).reshape(B * S, H * kd)        # (B*S, D)

    # TODO(synk): dropout (p=0.5) omitted -- eval/inference semantics.
    a = attn_out_add_layernorm(ctx2d, x2d, params["w_o"],
                               params["ln1_g"], params["ln1_b"])
    o = ffn_add_layernorm(a, params["w1"], params["b1"], params["w2"],
                          params["b2"], params["ln2_g"], params["ln2_b"])
    return o.reshape(B, S, D)


# --------------------------------------------------------------------------- #
# Parameter init (weights stored pre-transposed: (in_features, out_features)).
# --------------------------------------------------------------------------- #
def init_params(key, model_dim, num_heads, dtype=jnp.float32):
    kd = model_dim // num_heads
    inner = 4 * model_dim
    keys = jax.random.split(key, 12)

    def lin(k, fan_in, fan_out):
        bound = 1.0 / math.sqrt(fan_in)
        return jax.random.uniform(k, (fan_in, fan_out), dtype, -bound, bound)

    wq = lin(keys[0], model_dim, num_heads * kd)
    wk = lin(keys[1], model_dim, num_heads * kd)
    wv = lin(keys[2], model_dim, num_heads * kd)
    w_o = lin(keys[3], num_heads * kd, model_dim)
    w1 = lin(keys[4], model_dim, inner)
    b1 = jax.random.uniform(keys[5], (inner,), dtype,
                            -1.0 / math.sqrt(model_dim), 1.0 / math.sqrt(model_dim))
    w2 = lin(keys[6], inner, model_dim)
    b2 = jax.random.uniform(keys[7], (model_dim,), dtype,
                            -1.0 / math.sqrt(inner), 1.0 / math.sqrt(inner))
    ln1_g = 1.0 + 0.1 * jax.random.normal(keys[8], (model_dim,), dtype)
    ln1_b = 0.1 * jax.random.normal(keys[9], (model_dim,), dtype)
    ln2_g = 1.0 + 0.1 * jax.random.normal(keys[10], (model_dim,), dtype)
    ln2_b = 0.1 * jax.random.normal(keys[11], (model_dim,), dtype)

    return dict(w_qkv=jnp.concatenate([wq, wk, wv], axis=1),
                w_o=w_o, w1=w1, b1=b1, w2=w2, b2=b2,
                ln1_g=ln1_g, ln1_b=ln1_b, ln2_g=ln2_g, ln2_b=ln2_b)


# --------------------------------------------------------------------------- #
# Pure-JAX reference mirroring the PyTorch module.
# --------------------------------------------------------------------------- #
def reference_encoder(x, seq_len, params, *, num_heads):
    B, S, D = x.shape
    H = num_heads
    kd = D // H

    idx = jnp.arange(S)
    m1 = (idx[None, :] < seq_len[:, None]).astype(jnp.float32)       # (B, S)
    mask = m1[:, :, None] * m1[:, None, :]                            # (B, S, S)

    qkv = x @ params["w_qkv"]                                         # (B, S, 3*H*kd)
    qkv = qkv.reshape(B, S, 3, H, kd).transpose(2, 0, 3, 1, 4)
    q, k, v = qkv[0], qkv[1], qkv[2]                                  # (B, H, S, kd)

    att = jnp.einsum('bhqd,bhkd->bhqk', q, k) / math.sqrt(kd)
    att = att + (1.0 - mask[:, None]) * NEG_INF
    p = jax.nn.softmax(att, axis=-1)
    o = jnp.einsum('bhqk,bhkd->bhqd', p, v)
    o = o.transpose(0, 2, 1, 3).reshape(B, S, H * kd)
    o = o @ params["w_o"]

    def ln(z, g, b):
        mu = jnp.mean(z, -1, keepdims=True)
        zc = z - mu
        var = jnp.mean(zc * zc, -1, keepdims=True)
        return zc * lax.rsqrt(var + LN_EPS) * g + b

    a = ln(o + x, params["ln1_g"], params["ln1_b"])
    f = jnp.maximum(a @ params["w1"] + params["b1"], 0.0) @ params["w2"] + params["b2"]
    return ln(f + a, params["ln2_g"], params["ln2_b"])


if __name__ == "__main__":
    key = jax.random.PRNGKey(0)
    batch, seq, model_dim, num_heads = 2, 16, 128, 4

    kx, kp = jax.random.split(key)
    x = jax.random.normal(kx, (batch, seq, model_dim), dtype=jnp.float32)
    seq_len = jnp.array([16, 11], dtype=jnp.int32)
    params = init_params(kp, model_dim, num_heads)

    out = transformer_encoder(x, seq_len, params, num_heads=num_heads)
    out = jax.block_until_ready(out)

    with jax.default_matmul_precision("highest"):
        ref = reference_encoder(x, seq_len, params, num_heads=num_heads)
        ref = jax.block_until_ready(ref)

    assert out.shape == (batch, seq, model_dim)
    err = float(jnp.max(jnp.abs(out - ref)))
    assert jnp.allclose(out, ref, atol=1e-2, rtol=1e-2), err
    print("KERNEL_OK")
</pallas_src>

<mosaic_0001>
module attributes {stable_mosaic.version = 11 : i64} {
  func.func @_linear_kernel(%arg0: i32, %arg1: memref<32x128xf32, #tpu.memory_space<vmem>>, %arg2: memref<128x384xf32, #tpu.memory_space<vmem>>, %arg3: memref<32x384xf32, #tpu.memory_space<vmem>>) attributes {dimension_semantics = [#tpu.dimension_semantics<parallel>], iteration_bounds = array<i64: 1>, scalar_prefetch = 0 : i64, scratch_operands = 0 : i64, tpu.core_type = #tpu.core_type<tc>, window_params = [{transform_indices = @transform_0, window_bounds = array<i64: 32, 128>}, {pipeline_mode = #tpu.pipeline_mode<synchronous>, transform_indices = @transform_1, window_bounds = array<i64: 128, 384>}, {transform_indices = @transform_2, window_bounds = array<i64: 32, 384>}]} {
    %c0 = arith.constant 0 : index
    %c0_0 = arith.constant 0 : index
    %0 = vector.load %arg1[%c0, %c0_0] : memref<32x128xf32, #tpu.memory_space<vmem>>, vector<32x128xf32>
    %c0_1 = arith.constant 0 : index
    %c0_2 = arith.constant 0 : index
    %1 = vector.load %arg2[%c0_1, %c0_2] : memref<128x384xf32, #tpu.memory_space<vmem>>, vector<128x384xf32>
    %cst = arith.constant dense<0.000000e+00> : vector<32x384xf32>
    %2 = tpu.matmul %0, %1, %cst {dimension_numbers = #tpu.dot_dimension_numbers<[1], [0], [0], [1], [0, 0, 1, 1], [], []>} : vector<32x128xf32>, vector<128x384xf32>, vector<32x384xf32> -> vector<32x384xf32>
    %c0_3 = arith.constant 0 : index
    %c0_4 = arith.constant 0 : index
    %3 = vector.load %arg3[%c0_3, %c0_4] : memref<32x384xf32, #tpu.memory_space<vmem>>, vector<32x384xf32>
    tpu.vector_store %arg3[%c0_3, %c0_4], %2 {strides = array<i32>} : memref<32x384xf32, #tpu.memory_space<vmem>>, vector<32x384xf32>,
    return
  }
  func.func @transform_0(%arg0: i32) -> (i32, i32) {
    %c0_i32 = arith.constant 0 : i32
    %c0_i32_0 = arith.constant 0 : i32
    return %arg0, %c0_i32 : i32, i32
  }
  func.func @transform_1(%arg0: i32) -> (i32, i32) {
    %c0_i32 = arith.constant 0 : i32
    %c0_i32_0 = arith.constant 0 : i32
    %c0_i32_1 = arith.constant 0 : i32
    return %c0_i32, %c0_i32_0 : i32, i32
  }
  func.func @transform_2(%arg0: i32) -> (i32, i32) {
    %c0_i32 = arith.constant 0 : i32
    %c0_i32_0 = arith.constant 0 : i32
    return %arg0, %c0_i32 : i32, i32
  }
}

module attributes {stable_mosaic.version = 11 : i64} {
  func.func @_mha_kernel(%arg0: i32, %arg1: memref<2xi32, #tpu.memory_space<smem>>, %arg2: memref<1x4x16x32xf32, #tpu.memory_space<vmem>>, %arg3: memref<1x4x16x32xf32, #tpu.memory_space<vmem>>, %arg4: memref<1x4x16x32xf32, #tpu.memory_space<vmem>>, %arg5: memref<1x4x16x32xf32, #tpu.memory_space<vmem>>) attributes {dimension_semantics = [#tpu.dimension_semantics<parallel>], iteration_bounds = array<i64: 2>, scalar_prefetch = 1 : i64, scratch_operands = 0 : i64, tpu.core_type = #tpu.core_type<tc>, window_params = [{transform_indices = @transform_0, window_bounds = array<i64: 1, 4, 16, 32>}, {transform_indices = @transform_1, window_bounds = array<i64: 1, 4, 16, 32>}, {transform_indices = @transform_2, window_bounds = array<i64: 1, 4, 16, 32>}, {transform_indices = @transform_3, window_bounds = array<i64: 1, 4, 16, 32>}]} {
    %0 = arith.index_cast %arg0 : i32 to index
    %1 = memref.load %arg1[%0] : memref<2xi32, #tpu.memory_space<smem>>
    %c0 = arith.constant 0 : index
    %c0_0 = arith.constant 0 : index
    %c0_1 = arith.constant 0 : index
    %c0_2 = arith.constant 0 : index
    %2 = vector.load %arg2[%c0, %c0_0, %c0_1, %c0_2] : memref<1x4x16x32xf32, #tpu.memory_space<vmem>>, vector<1x4x16x32xf32>
    %3 = vector.shape_cast %2 : vector<1x4x16x32xf32> to vector<4x16x32xf32>
    %c0_3 = arith.constant 0 : index
    %c0_4 = arith.constant 0 : index
    %c0_5 = arith.constant 0 : index
    %c0_6 = arith.constant 0 : index
    %4 = vector.load %arg3[%c0_3, %c0_4, %c0_5, %c0_6] : memref<1x4x16x32xf32, #tpu.memory_space<vmem>>, vector<1x4x16x32xf32>
    %5 = vector.shape_cast %4 : vector<1x4x16x32xf32> to vector<4x16x32xf32>
    %c0_7 = arith.constant 0 : index
    %c0_8 = arith.constant 0 : index
    %c0_9 = arith.constant 0 : index
    %c0_10 = arith.constant 0 : index
    %6 = vector.load %arg4[%c0_7, %c0_8, %c0_9, %c0_10] : memref<1x4x16x32xf32, #tpu.memory_space<vmem>>, vector<1x4x16x32xf32>
    %7 = vector.shape_cast %6 : vector<1x4x16x32xf32> to vector<4x16x32xf32>
    "tpu.trace_start"() <{level = 10 : i32, message = "hqd,hkd->hqk"}> : () -> ()
    %cst = arith.constant dense<0.000000e+00> : vector<4x16x16xf32>
    %8 = tpu.matmul %3, %5, %cst {dimension_numbers = #tpu.dot_dimension_numbers<[2], [2], [1], [1], [0, 0, 0, 1, 1, 1], [0], [0]>} : vector<4x16x32xf32>, vector<4x16x32xf32>, vector<4x16x16xf32> -> vector<4x16x16xf32>
    "tpu.trace_stop"() : () -> ()
    %cst_11 = arith.constant 0.176776692 : f32
    %9 = vector.broadcast %cst_11 : f32 to vector<4x16x16xf32>
    %10 = arith.mulf %8, %9 : vector<4x16x16xf32>
    %11 = tpu.iota {dimensions = array<i32: 1>} : vector<4x16x16xi32>
    %12 = tpu.iota {dimensions = array<i32: 2>} : vector<4x16x16xi32>
    %13 = vector.broadcast %1 : i32 to vector<4x16x16xi32>
    %14 = arith.cmpi slt, %11, %13 : vector<4x16x16xi32>
    %15 = vector.broadcast %1 : i32 to vector<4x16x16xi32>
    %16 = arith.cmpi slt, %12, %15 : vector<4x16x16xi32>
    %17 = arith.andi %14, %16 : vector<4x16x16xi1>
    %18 = arith.extui %17 : vector<4x16x16xi1> to vector<4x16x16xi32>
    %19 = arith.sitofp %18 : vector<4x16x16xi32> to vector<4x16x16xf32>
    %cst_12 = arith.constant 1.000000e+00 : f32
    %20 = vector.broadcast %cst_12 : f32 to vector<4x16x16xf32>
    %21 = arith.subf %20, %19 : vector<4x16x16xf32>
    %cst_13 = arith.constant -1.000000e+05 : f32
    %22 = vector.broadcast %cst_13 : f32 to vector<4x16x16xf32>
    %23 = arith.mulf %21, %22 : vector<4x16x16xf32>
    %24 = arith.addf %10, %23 : vector<4x16x16xf32>
    %cst_14 = arith.constant dense<0xFF800000> : vector<4x16xf32>
    %25 = vector.multi_reduction <maximumf>, %24, %cst_14 [2] : vector<4x16x16xf32> to vector<4x16xf32>
    %26 = vector.shape_cast %25 : vector<4x16xf32> to vector<4x16x1xf32>
    %27 = vector.broadcast %26 : vector<4x16x1xf32> to vector<4x16x16xf32>
    %28 = arith.subf %24, %27 : vector<4x16x16xf32>
    %29 = math.exp %28 : vector<4x16x16xf32>
    %cst_15 = arith.constant dense<0.000000e+00> : vector<4x16xf32>
    %30 = vector.multi_reduction <add>, %29, %cst_15 [2] : vector<4x16x16xf32> to vector<4x16xf32>
    %31 = vector.shape_cast %30 : vector<4x16xf32> to vector<4x16x1xf32>
    %32 = tpu.reciprocal %31 {approx = true} : vector<4x16x1xf32> -> vector<4x16x1xf32>
    %33 = vector.broadcast %32 : vector<4x16x1xf32> to vector<4x16x16xf32>
    %34 = arith.mulf %29, %33 : vector<4x16x16xf32>
    "tpu.trace_start"() <{level = 10 : i32, message = "hqk,hkd->hqd"}> : () -> ()
    %cst_16 = arith.constant dense<0.000000e+00> : vector<4x16x32xf32>
    %35 = tpu.matmul %34, %7, %cst_16 {dimension_numbers = #tpu.dot_dimension_numbers<[2], [1], [1], [2], [0, 0, 0, 1, 1, 2], [0], [0]>} : vector<4x16x16xf32>, vector<4x16x32xf32>, vector<4x16x32xf32> -> vector<4x16x32xf32>
    "tpu.trace_stop"() : () -> ()
    %c0_17 = arith.constant 0 : index
    %c0_18 = arith.constant 0 : index
    %c0_19 = arith.constant 0 : index
    %c0_20 = arith.constant 0 : index
    %36 = vector.load %arg5[%c0_17, %c0_18, %c0_19, %c0_20] : memref<1x4x16x32xf32, #tpu.memory_space<vmem>>, vector<1x4x16x32xf32>
    %37 = vector.shape_cast %36 : vector<1x4x16x32xf32> to vector<4x16x32xf32>
    %38 = vector.shape_cast %35 : vector<4x16x32xf32> to vector<1x4x16x32xf32>
    tpu.vector_store %arg5[%c0_17, %c0_18, %c0_19, %c0_20], %38 {strides = array<i32>} : memref<1x4x16x32xf32, #tpu.memory_space<vmem>>, vector<1x4x16x32xf32>,
    return
  }
  func.func @transform_0(%arg0: i32, %arg1: memref<2xi32, #tpu.memory_space<smem>>) -> (i32, i32, i32, i32) {
    %c0_i32 = arith.constant 0 : i32
    %c0_i32_0 = arith.constant 0 : i32
    %c0_i32_1 = arith.constant 0 : i32
    %c0_i32_2 = arith.constant 0 : i32
    return %arg0, %c0_i32, %c0_i32_0, %c0_i32_1 : i32, i32, i32, i32
  }
  func.func @transform_1(%arg0: i32, %arg1: memref<2xi32, #tpu.memory_space<smem>>) -> (i32, i32, i32, i32) {
    %c0_i32 = arith.constant 0 : i32
    %c0_i32_0 = arith.constant 0 : i32
    %c0_i32_1 = arith.constant 0 : i32
    %c0_i32_2 = arith.constant 0 : i32
    return %arg0, %c0_i32, %c0_i32_0, %c0_i32_1 : i32, i32, i32, i32
  }
  func.func @transform_2(%arg0: i32, %arg1: memref<2xi32, #tpu.memory_space<smem>>) -> (i32, i32, i32, i32) {
    %c0_i32 = arith.constant 0 : i32
    %c0_i32_0 = arith.constant 0 : i32
    %c0_i32_1 = arith.constant 0 : i32
    %c0_i32_2 = arith.constant 0 : i32
    return %arg0, %c0_i32, %c0_i32_0, %c0_i32_1 : i32, i32, i32, i32
  }
  func.func @transform_3(%arg0: i32, %arg1: memref<2xi32, #tpu.memory_space<smem>>) -> (i32, i32, i32, i32) {
    %c0_i32 = arith.constant 0 : i32
    %c0_i32_0 = arith.constant 0 : i32
    %c0_i32_1 = arith.constant 0 : i32
    %c0_i32_2 = arith.constant 0 : i32
    return %arg0, %c0_i32, %c0_i32_0, %c0_i32_1 : i32, i32, i32, i32
  }
}

module attributes {stable_mosaic.version = 11 : i64} {
  func.func @_proj_add_ln_kernel(%arg0: i32, %arg1: memref<32x128xf32, #tpu.memory_space<vmem>>, %arg2: memref<32x128xf32, #tpu.memory_space<vmem>>, %arg3: memref<128x128xf32, #tpu.memory_space<vmem>>, %arg4: memref<1x128xf32, #tpu.memory_space<vmem>>, %arg5: memref<1x128xf32, #tpu.memory_space<vmem>>, %arg6: memref<32x128xf32, #tpu.memory_space<vmem>>) attributes {dimension_semantics = [#tpu.dimension_semantics<parallel>], iteration_bounds = array<i64: 1>, scalar_prefetch = 0 : i64, scratch_operands = 0 : i64, tpu.core_type = #tpu.core_type<tc>, window_params = [{transform_indices = @transform_0, window_bounds = array<i64: 32, 128>}, {transform_indices = @transform_1, window_bounds = array<i64: 32, 128>}, {pipeline_mode = #tpu.pipeline_mode<synchronous>, transform_indices = @transform_2, window_bounds = array<i64: 128, 128>}, {pipeline_mode = #tpu.pipeline_mode<synchronous>, transform_indices = @transform_3, window_bounds = array<i64: 1, 128>}, {pipeline_mode = #tpu.pipeline_mode<synchronous>, transform_indices = @transform_4, window_bounds = array<i64: 1, 128>}, {transform_indices = @transform_5, window_bounds = array<i64: 32, 128>}]} {
    %c0 = arith.constant 0 : index
    %c0_0 = arith.constant 0 : index
    %0 = vector.load %arg1[%c0, %c0_0] : memref<32x128xf32, #tpu.memory_space<vmem>>, vector<32x128xf32>
    %c0_1 = arith.constant 0 : index
    %c0_2 = arith.constant 0 : index
    %1 = vector.load %arg3[%c0_1, %c0_2] : memref<128x128xf32, #tpu.memory_space<vmem>>, vector<128x128xf32>
    %cst = arith.constant dense<0.000000e+00> : vector<32x128xf32>
    %2 = tpu.matmul %0, %1, %cst {dimension_numbers = #tpu.dot_dimension_numbers<[1], [0], [0], [1], [0, 0, 1, 1], [], []>} : vector<32x128xf32>, vector<128x128xf32>, vector<32x128xf32> -> vector<32x128xf32>
    %c0_3 = arith.constant 0 : index
    %c0_4 = arith.constant 0 : index
    %3 = vector.load %arg2[%c0_3, %c0_4] : memref<32x128xf32, #tpu.memory_space<vmem>>, vector<32x128xf32>
    %4 = arith.addf %2, %3 : vector<32x128xf32>
    %cst_5 = arith.constant dense<0.000000e+00> : vector<32xf32>
    %5 = vector.multi_reduction <add>, %4, %cst_5 [1] : vector<32x128xf32> to vector<32xf32>
    %6 = vector.shape_cast %5 : vector<32xf32> to vector<32x1xf32>
    %cst_6 = arith.constant 1.280000e+02 : f32
    %7 = vector.broadcast %cst_6 : f32 to vector<32x1xf32>
    %8 = arith.divf %6, %7 : vector<32x1xf32>
    %9 = vector.broadcast %8 : vector<32x1xf32> to vector<32x128xf32>
    %10 = arith.subf %4, %9 : vector<32x128xf32>
    %11 = arith.mulf %10, %10 : vector<32x128xf32>
    %cst_7 = arith.constant dense<0.000000e+00> : vector<32xf32>
    %12 = vector.multi_reduction <add>, %11, %cst_7 [1] : vector<32x128xf32> to vector<32xf32>
    %13 = vector.shape_cast %12 : vector<32xf32> to vector<32x1xf32>
    %cst_8 = arith.constant 1.280000e+02 : f32
    %14 = vector.broadcast %cst_8 : f32 to vector<32x1xf32>
    %15 = arith.divf %13, %14 : vector<32x1xf32>
    %cst_9 = arith.constant 9.99999974E-6 : f32
    %16 = vector.broadcast %cst_9 : f32 to vector<32x1xf32>
    %17 = arith.addf %15, %16 : vector<32x1xf32>
    %18 = math.rsqrt %17 : vector<32x1xf32>
    %19 = vector.broadcast %18 : vector<32x1xf32> to vector<32x128xf32>
    %20 = arith.mulf %10, %19 : vector<32x128xf32>
    %c0_10 = arith.constant 0 : index
    %c0_11 = arith.constant 0 : index
    %21 = vector.load %arg4[%c0_10, %c0_11] : memref<1x128xf32, #tpu.memory_space<vmem>>, vector<1x128xf32>
    %22 = vector.broadcast %21 : vector<1x128xf32> to vector<32x128xf32>
    %23 = arith.mulf %20, %22 : vector<32x128xf32>
    %c0_12 = arith.constant 0 : index
    %c0_13 = arith.constant 0 : index
    %24 = vector.load %arg5[%c0_12, %c0_13] : memref<1x128xf32, #tpu.memory_space<vmem>>, vector<1x128xf32>
    %25 = vector.broadcast %24 : vector<1x128xf32> to vector<32x128xf32>
    %26 = arith.addf %23, %25 : vector<32x128xf32>
    %c0_14 = arith.constant 0 : index
    %c0_15 = arith.constant 0 : index
    %27 = vector.load %arg6[%c0_14, %c0_15] : memref<32x128xf32, #tpu.memory_space<vmem>>, vector<32x128xf32>
    tpu.vector_store %arg6[%c0_14, %c0_15], %26 {strides = array<i32>} : memref<32x128xf32, #tpu.memory_space<vmem>>, vector<32x128xf32>,
    return
  }
  func.func @transform_0(%arg0: i32) -> (i32, i32) {
    %c0_i32 = arith.constant 0 : i32
    %c0_i32_0 = arith.constant 0 : i32
    return %arg0, %c0_i32 : i32, i32
  }
  func.func @transform_1(%arg0: i32) -> (i32, i32) {
    %c0_i32 = arith.constant 0 : i32
    %c0_i32_0 = arith.constant 0 : i32
    return %arg0, %c0_i32 : i32, i32
  }
  func.func @transform_2(%arg0: i32) -> (i32, i32) {
    %c0_i32 = arith.constant 0 : i32
    %c0_i32_0 = arith.constant 0 : i32
    %c0_i32_1 = arith.constant 0 : i32
    return %c0_i32, %c0_i32_0 : i32, i32
  }
  func.func @transform_3(%arg0: i32) -> (i32, i32) {
    %c0_i32 = arith.constant 0 : i32
    %c0_i32_0 = arith.constant 0 : i32
    %c0_i32_1 = arith.constant 0 : i32
    return %c0_i32, %c0_i32_0 : i32, i32
  }
  func.func @transform_4(%arg0: i32) -> (i32, i32) {
    %c0_i32 = arith.constant 0 : i32
    %c0_i32_0 = arith.constant 0 : i32
    %c0_i32_1 = arith.constant 0 : i32
    return %c0_i32, %c0_i32_0 : i32, i32
  }
  func.func @transform_5(%arg0: i32) -> (i32, i32) {
    %c0_i32 = arith.constant 0 : i32
    %c0_i32_0 = arith.constant 0 : i32
    return %arg0, %c0_i32 : i32, i32
  }
}

module attributes {stable_mosaic.version = 11 : i64} {
  func.func @_ffn_add_ln_kernel(%arg0: i32, %arg1: memref<32x128xf32, #tpu.memory_space<vmem>>, %arg2: memref<128x512xf32, #tpu.memory_space<vmem>>, %arg3: memref<1x512xf32, #tpu.memory_space<vmem>>, %arg4: memref<512x128xf32, #tpu.memory_space<vmem>>, %arg5: memref<1x128xf32, #tpu.memory_space<vmem>>, %arg6: memref<1x128xf32, #tpu.memory_space<vmem>>, %arg7: memref<1x128xf32, #tpu.memory_space<vmem>>, %arg8: memref<32x128xf32, #tpu.memory_space<vmem>>) attributes {dimension_semantics = [#tpu.dimension_semantics<parallel>], iteration_bounds = array<i64: 1>, scalar_prefetch = 0 : i64, scratch_operands = 0 : i64, tpu.core_type = #tpu.core_type<tc>, window_params = [{transform_indices = @transform_0, window_bounds = array<i64: 32, 128>}, {pipeline_mode = #tpu.pipeline_mode<synchronous>, transform_indices = @transform_1, window_bounds = array<i64: 128, 512>}, {pipeline_mode = #tpu.pipeline_mode<synchronous>, transform_indices = @transform_2, window_bounds = array<i64: 1, 512>}, {pipeline_mode = #tpu.pipeline_mode<synchronous>, transform_indices = @transform_3, window_bounds = array<i64: 512, 128>}, {pipeline_mode = #tpu.pipeline_mode<synchronous>, transform_indices = @transform_4, window_bounds = array<i64: 1, 128>}, {pipeline_mode = #tpu.pipeline_mode<synchronous>, transform_indices = @transform_5, window_bounds = array<i64: 1, 128>}, {pipeline_mode = #tpu.pipeline_mode<synchronous>, transform_indices = @transform_6, window_bounds = array<i64: 1, 128>}, {transform_indices = @transform_7, window_bounds = array<i64: 32, 128>}]} {
    %c0 = arith.constant 0 : index
    %c0_0 = arith.constant 0 : index
    %0 = vector.load %arg1[%c0, %c0_0] : memref<32x128xf32, #tpu.memory_space<vmem>>, vector<32x128xf32>
    %c0_1 = arith.constant 0 : index
    %c0_2 = arith.constant 0 : index
    %1 = vector.load %arg2[%c0_1, %c0_2] : memref<128x512xf32, #tpu.memory_space<vmem>>, vector<128x512xf32>
    %cst = arith.constant dense<0.000000e+00> : vector<32x512xf32>
    %2 = tpu.matmul %0, %1, %cst {dimension_numbers = #tpu.dot_dimension_numbers<[1], [0], [0], [1], [0, 0, 1, 1], [], []>} : vector<32x128xf32>, vector<128x512xf32>, vector<32x512xf32> -> vector<32x512xf32>
    %c0_3 = arith.constant 0 : index
    %c0_4 = arith.constant 0 : index
    %3 = vector.load %arg3[%c0_3, %c0_4] : memref<1x512xf32, #tpu.memory_space<vmem>>, vector<1x512xf32>
    %4 = vector.broadcast %3 : vector<1x512xf32> to vector<32x512xf32>
    %5 = arith.addf %2, %4 : vector<32x512xf32>
    %cst_5 = arith.constant 0.000000e+00 : f32
    %6 = vector.broadcast %cst_5 : f32 to vector<32x512xf32>
    %7 = arith.maximumf %5, %6 : vector<32x512xf32>
    %c0_6 = arith.constant 0 : index
    %c0_7 = arith.constant 0 : index
    %8 = vector.load %arg4[%c0_6, %c0_7] : memref<512x128xf32, #tpu.memory_space<vmem>>, vector<512x128xf32>
    %cst_8 = arith.constant dense<0.000000e+00> : vector<32x128xf32>
    %9 = tpu.matmul %7, %8, %cst_8 {dimension_numbers = #tpu.dot_dimension_numbers<[1], [0], [0], [1], [0, 0, 1, 1], [], []>} : vector<32x512xf32>, vector<512x128xf32>, vector<32x128xf32> -> vector<32x128xf32>
    %c0_9 = arith.constant 0 : index
    %c0_10 = arith.constant 0 : index
    %10 = vector.load %arg5[%c0_9, %c0_10] : memref<1x128xf32, #tpu.memory_space<vmem>>, vector<1x128xf32>
    %11 = vector.broadcast %10 : vector<1x128xf32> to vector<32x128xf32>
    %12 = arith.addf %9, %11 : vector<32x128xf32>
    %13 = arith.addf %12, %0 : vector<32x128xf32>
    %cst_11 = arith.constant dense<0.000000e+00> : vector<32xf32>
    %14 = vector.multi_reduction <add>, %13, %cst_11 [1] : vector<32x128xf32> to vector<32xf32>
    %15 = vector.shape_cast %14 : vector<32xf32> to vector<32x1xf32>
    %cst_12 = arith.constant 1.280000e+02 : f32
    %16 = vector.broadcast %cst_12 : f32 to vector<32x1xf32>
    %17 = arith.divf %15, %16 : vector<32x1xf32>
    %18 = vector.broadcast %17 : vector<32x1xf32> to vector<32x128xf32>
    %19 = arith.subf %13, %18 : vector<32x128xf32>
    %20 = arith.mulf %19, %19 : vector<32x128xf32>
    %cst_13 = arith.constant dense<0.000000e+00> : vector<32xf32>
    %21 = vector.multi_reduction <add>, %20, %cst_13 [1] : vector<32x128xf32> to vector<32xf32>
    %22 = vector.shape_cast %21 : vector<32xf32> to vector<32x1xf32>
    %cst_14 = arith.constant 1.280000e+02 : f32
    %23 = vector.broadcast %cst_14 : f32 to vector<32x1xf32>
    %24 = arith.divf %22, %23 : vector<32x1xf32>
    %cst_15 = arith.constant 9.99999974E-6 : f32
    %25 = vector.broadcast %cst_15 : f32 to vector<32x1xf32>
    %26 = arith.addf %24, %25 : vector<32x1xf32>
    %27 = math.rsqrt %26 : vector<32x1xf32>
    %28 = vector.broadcast %27 : vector<32x1xf32> to vector<32x128xf32>
    %29 = arith.mulf %19, %28 : vector<32x128xf32>
    %c0_16 = arith.constant 0 : index
    %c0_17 = arith.constant 0 : index
    %30 = vector.load %arg6[%c0_16, %c0_17] : memref<1x128xf32, #tpu.memory_space<vmem>>, vector<1x128xf32>
    %31 = vector.broadcast %30 : vector<1x128xf32> to vector<32x128xf32>
    %32 = arith.mulf %29, %31 : vector<32x128xf32>
    %c0_18 = arith.constant 0 : index
    %c0_19 = arith.constant 0 : index
    %33 = vector.load %arg7[%c0_18, %c0_19] : memref<1x128xf32, #tpu.memory_space<vmem>>, vector<1x128xf32>
    %34 = vector.broadcast %33 : vector<1x128xf32> to vector<32x128xf32>
    %35 = arith.addf %32, %34 : vector<32x128xf32>
    %c0_20 = arith.constant 0 : index
    %c0_21 = arith.constant 0 : index
    %36 = vector.load %arg8[%c0_20, %c0_21] : memref<32x128xf32, #tpu.memory_space<vmem>>, vector<32x128xf32>
    tpu.vector_store %arg8[%c0_20, %c0_21], %35 {strides = array<i32>} : memref<32x128xf32, #tpu.memory_space<vmem>>, vector<32x128xf32>,
    return
  }
  func.func @transform_0(%arg0: i32) -> (i32, i32) {
    %c0_i32 = arith.constant 0 : i32
    %c0_i32_0 = arith.constant 0 : i32
    return %arg0, %c0_i32 : i32, i32
  }
  func.func @transform_1(%arg0: i32) -> (i32, i32) {
    %c0_i32 = arith.constant 0 : i32
    %c0_i32_0 = arith.constant 0 : i32
    %c0_i32_1 = arith.constant 0 : i32
    return %c0_i32, %c0_i32_0 : i32, i32
  }
  func.func @transform_2(%arg0: i32) -> (i32, i32) {
    %c0_i32 = arith.constant 0 : i32
    %c0_i32_0 = arith.constant 0 : i32
    %c0_i32_1 = arith.constant 0 : i32
    return %c0_i32, %c0_i32_0 : i32, i32
  }
  func.func @transform_3(%arg0: i32) -> (i32, i32) {
    %c0_i32 = arith.constant 0 : i32
    %c0_i32_0 = arith.constant 0 : i32
    %c0_i32_1 = arith.constant 0 : i32
    return %c0_i32, %c0_i32_0 : i32, i32
  }
  func.func @transform_4(%arg0: i32) -> (i32, i32) {
    %c0_i32 = arith.constant 0 : i32
    %c0_i32_0 = arith.constant 0 : i32
    %c0_i32_1 = arith.constant 0 : i32
    return %c0_i32, %c0_i32_0 : i32, i32
  }
  func.func @transform_5(%arg0: i32) -> (i32, i32) {
    %c0_i32 = arith.constant 0 : i32
    %c0_i32_0 = arith.constant 0 : i32
    %c0_i32_1 = arith.constant 0 : i32
    return %c0_i32, %c0_i32_0 : i32, i32
  }
  func.func @transform_6(%arg0: i32) -> (i32, i32) {
    %c0_i32 = arith.constant 0 : i32
    %c0_i32_0 = arith.constant 0 : i32
    %c0_i32_1 = arith.constant 0 : i32
    return %c0_i32, %c0_i32_0 : i32, i32
  }
  func.func @transform_7(%arg0: i32) -> (i32, i32) {
    %c0_i32 = arith.constant 0 : i32
    %c0_i32_0 = arith.constant 0 : i32
    return %arg0, %c0_i32 : i32, i32
  }
}

</mosaic_0001>

<bundles_post_ra>
// kernel: transformer_encoder.4
= control target key start
LH: loop header
LB: loop body
LE: loop exit
PB: predicated region body
PF: predicated region fallthrough
CT: control target
= control target key end

     0   :  { %7 = vsyncpa [#allocation3], 0  ;;  %s337_s0 = inlined_call_operand.hbm [shape: f32[32,128], index: 0, kind: input, shape index: {}]   ;;  %s338_s1 = inlined_call_operand.hbm [shape: f32[128,384], index: 1, kind: input, shape index: {}]   ;;  %s339_s2 = inlined_call_operand.vmem [shape: f32[32,384], index: 2, kind: output, shape index: {}]  }
   0x1   :  { %s13_s11 = sshll.u32 %s337_s0, 4  ;;  %s14_s11 = int_to_ptr.hbm [resolvable:$true] %s13_s11 }
   0x2   :  { %8 = vsyncpa [#allocation5], 0  ;;  %s274_s12 = smov [#allocation2]   ;;  %s26_s16 = sshll.u32 %s338_s1, 4  ;;  %s27_s16 = int_to_ptr.hbm [resolvable:$true] %s26_s16 }
   0x3   :  { %s15_s13 = sshll.u32 %s274_s12, 4  ;;  %s275_s17 = smov 128   ;;  %s16_s13 = int_to_ptr.vmem [resolvable:$true] %s15_s13 }
   0x4   :  { %s276_s18 = smov 8   ;;  %s277_s19 = smov [#allocation4]  }
   0x5   :  { %21 = dma.hbm_to_vmem [thread:$0]  %s14_s11, 512, %s16_s13, [#allocation3], %s275_s17, %s275_s17, %s276_s18  }
   0x6   :  { %s28_s20 = sshll.u32 %s277_s19, 4  ;;  %s278_s21 = smov 384   ;;  %s29_s20 = int_to_ptr.vmem [resolvable:$true] %s28_s20 }
   0x7   :  { %s279_s22 = smov 24  }
   0x8   :  { %34 = dma.hbm_to_vmem [thread:$0]  %s27_s16, 6144, %s29_s20, [#allocation5], %s278_s21, %s278_s21, %s279_s22  }
   0x9   :  { %270 = dma.done.wait [#allocation3], 512  }
   0xa   :  { %271 = vsyncadd [#allocation3], 4294966784 }
   0xb   :  { %272 = dma.done.wait [#allocation5], 6144  }
   0xc   :  { %273 = vsyncadd [#allocation5], 4294961152  ;;  %v94_v0 = vld [vmem:[#allocation4 + $0x178] sm:$0xff]  ;;  %v91_v1 = vld [vmem:[#allocation4 + $0x160] sm:$0xff] }
   0xd   :  { %153 = vmatpush.msra.mxu2 %v94_v0  ;;  %v93_v2 = vld [vmem:[#allocation4 + $0x170] sm:$0xff]  ;;  %v92_v3 = vld [vmem:[#allocation4 + $0x168] sm:$0xff]  ;;  %v90_v5 = vld [vmem:[#allocation4 + $0x158] sm:$0xff] }
   0xe   :  { %v88_v4 = vld [vmem:[#allocation4 + $0x148] sm:$0xff]  ;;  %124 = vmatpush.msra.mxu1 %v93_v2  ;;  %200 = vmatpush.msra.mxu3 %v92_v3  ;;  %v89_v6 = vld [vmem:[#allocation4 + $0x150] sm:$0xff]  ;;  %v87_v7 = vld [vmem:[#allocation4 + $0x140] sm:$0xff] }
   0xf   :  { %154 = vmatpush.msra.mxu2 %v91_v1  ;;  %v86_v8 = vld [vmem:[#allocation4 + $0x138] sm:$0xff]  ;;  %95 = vmatpush.msra.mxu0 %v92_v3  ;;  %v85_v9 = vld [vmem:[#allocation4 + $0x130] sm:$0xff]  ;;  %v84_v10 = vld [vmem:[#allocation4 + $0x128] sm:$0xff] }
  0x10   :  { %125 = vmatpush.msra.mxu1 %v90_v5  ;;  %201 = vmatpush.msra.mxu3 %v89_v6  ;;  %v83_v11 = vld [vmem:[#allocation4 + $0x120] sm:$0xff]  ;;  %v82_v12 = vld [vmem:[#allocation4 + $0x118] sm:$0xff]  ;;  %v81_v13 = vld [vmem:[#allocation4 + $0x110] sm:$0xff] }
  0x11   :  { %155 = vmatpush.msra.mxu2 %v88_v4  ;;  %96 = vmatpush.msra.mxu0 %v89_v6  ;;  %v80_v14 = vld [vmem:[#allocation4 + $0x108] sm:$0xff]  ;;  %v79_v15 = vld [vmem:[#allocation4 + $0x100] sm:$0xff]  ;;  %v78_v16 = vld [vmem:[#allocation4 + $0xf8] sm:$0xff] }
  0x12   :  { %126 = vmatpush.msra.mxu1 %v87_v7  ;;  %202 = vmatpush.msra.mxu3 %v86_v8  ;;  %v77_v17 = vld [vmem:[#allocation4 + $0xf0] sm:$0xff]  ;;  %v76_v18 = vld [vmem:[#allocation4 + $0xe8] sm:$0xff]  ;;  %v75_v19 = vld [vmem:[#allocation4 + $0xe0] sm:$0xff] }
  0x13   :  { %156 = vmatpush.msra.mxu2 %v85_v9  ;;  %97 = vmatpush.msra.mxu0 %v86_v8  ;;  %v74_v20 = vld [vmem:[#allocation4 + $0xd8] sm:$0xff]  ;;  %v73_v21 = vld [vmem:[#allocation4 + $0xd0] sm:$0xff]  ;;  %v72_v22 = vld [vmem:[#allocation4 + $0xc8] sm:$0xff] }
  0x14   :  { %127 = vmatpush.msra.mxu1 %v84_v10  ;;  %203 = vmatpush.msra.mxu3 %v83_v11  ;;  %v71_v23 = vld [vmem:[#allocation4 + $0xc0] sm:$0xff]  ;;  %v70_v24 = vld [vmem:[#allocation4 + $0xb8] sm:$0xff]  ;;  %v69_v25 = vld [vmem:[#allocation4 + $0xb0] sm:$0xff] }
  0x15   :  { %157 = vmatpush.msra.mxu2 %v82_v12  ;;  %98 = vmatpush.msra.mxu0 %v83_v11  ;;  %v68_v26 = vld [vmem:[#allocation4 + $0xa8] sm:$0xff]  ;;  %v67_v27 = vld [vmem:[#allocation4 + $0xa0] sm:$0xff]  ;;  %v66_v28 = vld [vmem:[#allocation4 + $0x98] sm:$0xff] }
  0x16   :  { %128 = vmatpush.msra.mxu1 %v81_v13  ;;  %204 = vmatpush.msra.mxu3 %v80_v14  ;;  %v65_v29 = vld [vmem:[#allocation4 + $0x90] sm:$0xff]  ;;  %v64_v30 = vld [vmem:[#allocation4 + $0x88] sm:$0xff]  ;;  %v63_v31 = vld [vmem:[#allocation4 + $0x80] sm:$0xff] }
  0x17   :  { %158 = vmatpush.msra.mxu2 %v79_v15  ;;  %99 = vmatpush.msra.mxu0 %v80_v14  ;;  %v62_v32 = vld [vmem:[#allocation4 + $0x78] sm:$0xff]  ;;  %v61_v33 = vld [vmem:[#allocation4 + $0x70] sm:$0xff]  ;;  %v60_v34 = vld [vmem:[#allocation4 + $0x68] sm:$0xff] }
  0x18   :  { %129 = vmatpush.msra.mxu1 %v78_v16  ;;  %205 = vmatpush.msra.mxu3 %v77_v17  ;;  %v59_v35 = vld [vmem:[#allocation4 + $0x60] sm:$0xff]  ;;  %v58_v36 = vld [vmem:[#allocation4 + $0x58] sm:$0xff]  ;;  %v57_v37 = vld [vmem:[#allocation4 + $0x50] sm:$0xff] }
  0x19   :  { %159 = vmatpush.msra.mxu2 %v76_v18  ;;  %100 = vmatpush.msra.mxu0 %v77_v17  ;;  %v56_v38 = vld [vmem:[#allocation4 + $0x48] sm:$0xff]  ;;  %v55_v39 = vld [vmem:[#allocation4 + $0x40] sm:$0xff]  ;;  %v54_v40 = vld [vmem:[#allocation4 + $0x38] sm:$0xff] }
  0x1a   :  { %130 = vmatpush.msra.mxu1 %v75_v19  ;;  %206 = vmatpush.msra.mxu3 %v74_v20  ;;  %v53_v41 = vld [vmem:[#allocation4 + $0x30] sm:$0xff]  ;;  %v52_v42 = vld [vmem:[#allocation4 + $0x28] sm:$0xff]  ;;  %v51_v43 = vld [vmem:[#allocation4 + $0x20] sm:$0xff] }
  0x1b   :  { %160 = vmatpush.msra.mxu2 %v73_v21  ;;  %101 = vmatpush.msra.mxu0 %v74_v20  ;;  %v50_v44 = vld [vmem:[#allocation4 + $0x18] sm:$0xff]  ;;  %v49_v45 = vld [vmem:[#allocation4 + $0x10] sm:$0xff]  ;;  %v43_v46 = vld [vmem:[#allocation2] sm:$0xff] }
  0x1c   :  { %131 = vmatpush.msra.mxu1 %v72_v22  ;;  %207 = vmatpush.msra.mxu3 %v71_v23  ;;  %v48_v47 = vld [vmem:[#allocation4 + $0x8] sm:$0xff]  ;;  %v47_v48 = vld [vmem:[#allocation4] sm:$0xff]  ;;  %v45_v50 = vld [vmem:[#allocation2 + $0x10] sm:$0xff] }
  0x1d   :  { %161 = vmatpush.msra.mxu2 %v70_v24  ;;  %102 = vmatpush.msra.mxu0 %v71_v23  ;;  %v44_v49 = vld [vmem:[#allocation2 + $0x8] sm:$0xff]  ;;  %v46_v51 = vld [vmem:[#allocation2 + $0x18] sm:$0xff] }
  0x1e   :  { %132 = vmatpush.msra.mxu1 %v69_v25  ;;  %208 = vmatpush.msra.mxu3 %v68_v26 }
  0x1f   :  { %162 = vmatpush.msra.mxu2 %v67_v27  ;;  %103 = vmatpush.msra.mxu0 %v68_v26 }
  0x20   :  { %133 = vmatpush.msra.mxu1 %v66_v28  ;;  %209 = vmatpush.msra.mxu3 %v65_v29 }
  0x21   :  { %163 = vmatpush.msra.mxu2 %v64_v30  ;;  %104 = vmatpush.msra.mxu0 %v65_v29 }
  0x22   :  { %134 = vmatpush.msra.mxu1 %v63_v31  ;;  %210 = vmatpush.msra.mxu3 %v62_v32 }
  0x23   :  { %164 = vmatpush.msra.mxu2 %v61_v33  ;;  %105 = vmatpush.msra.mxu0 %v62_v32 }
  0x24   :  { %135 = vmatpush.msra.mxu1 %v60_v34  ;;  %211 = vmatpush.msra.mxu3 %v59_v35 }
  0x25   :  { %165 = vmatpush.msra.mxu2 %v58_v36  ;;  %106 = vmatpush.msra.mxu0 %v59_v35 }
  0x26   :  { %136 = vmatpush.msra.mxu1 %v57_v37  ;;  %212 = vmatpush.msra.mxu3 %v56_v38 }
  0x27   :  { %166 = vmatpush.msra.mxu2 %v55_v39  ;;  %107 = vmatpush.msra.mxu0 %v56_v38 }
  0x28   :  { %137 = vmatpush.msra.mxu1 %v54_v40  ;;  %213 = vmatpush.msra.mxu3 %v53_v41 }
  0x29   :  { %167 = vmatpush.msra.mxu2 %v52_v42  ;;  %108 = vmatpush.msra.mxu0 %v53_v41 }
  0x2a   :  { %138 = vmatpush.msra.mxu1 %v51_v43  ;;  %214 = vmatpush.msra.mxu3 %v50_v44 }
  0x2b   :  { %168 = vmatpush.msra.mxu2 %v49_v45  ;;  %109 = vmatpush.msra.mxu0 %v50_v44 }
  0x2c   :  { %169 = vmatmul.f32.vlgmr.msra.gmra.mxu2 %v43_v46  ;;  %139 = vmatpush.msra.mxu1 %v48_v47 }
  0x2d   :  { %140 = vmatmul.f32.vlgmr.msra.gmra.mxu1 %v43_v46  ;;  %215 = vmatpush.msra.mxu3 %v47_v48 }
  0x2e   :  { %114 = vmatmul.f32.vlgmr.msra.gmra.mxu3 %v44_v49  ;;  %110 = vmatpush.msra.mxu0 %v47_v48 }
  0x2f   :  { %111 = vmatmul.f32.vlgmr.msra.gmra.mxu0 %v43_v46 }
  0x34   :  { %172 = vmatmul.f32.gmra.mxu2 %v44_v49 }
  0x35   :  { %143 = vmatmul.f32.gmra.mxu1 %v44_v49 }
  0x36   :  { %117 = vmatmul.f32.gmra.mxu3 %v45_v50 }
  0x3c   :  { %175 = vmatmul.f32.gmra.mxu2 %v45_v50 }
  0x3d   :  { %146 = vmatmul.f32.gmra.mxu1 %v45_v50 }
  0x3e   :  { %120 = vmatmul.f32.gmra.mxu3 %v46_v51 }
  0x44   :  { %178 = vmatmul.f32.gmra.mxu2 %v46_v51 }
  0x45   :  { %149 = vmatmul.f32.gmra.mxu1 %v46_v51 }
  0xaa   :  { %v141_v52 = vpop.f32.mrf.mxu1 }
  0xab   :  { %183 = vst [vmem:[%s339_s2 + $0x8] sm:$0xff] %v141_v52 }
  0xac   :  { %v112_v53 = vpop.f32.mrf.mxu0 }
  0xad   :  { %182 = vst [vmem:[%s339_s2] sm:$0xff] %v112_v53 }
  0xaf   :  { %v170_v54 = vpop.f32.mrf.mxu2 }
  0xb0   :  { %184 = vst [vmem:[%s339_s2 + $0x10] sm:$0xff] %v170_v54 }
  0xb1   :  { %v115_v55 = vpop.f32.mrf.mxu3 }
  0xb2   :  { %185 = vst [vmem:[%s339_s2 + $0x18] sm:$0xff] %v115_v55  ;;  %v144_v56 = vpop.f32.mrf.mxu1 }
  0xb3   :  { %186 = vst [vmem:[%s339_s2 + $0x20] sm:$0xff] %v144_v56 }
  0xb7   :  { %v173_v57 = vpop.f32.mrf.mxu2 }
  0xb8   :  { %187 = vst [vmem:[%s339_s2 + $0x28] sm:$0xff] %v173_v57 }
  0xb9   :  { %v118_v58 = vpop.f32.mrf.mxu3 }
  0xba   :  { %188 = vst [vmem:[%s339_s2 + $0x30] sm:$0xff] %v118_v58  ;;  %v147_v59 = vpop.f32.mrf.mxu1 }
  0xbb   :  { %189 = vst [vmem:[%s339_s2 + $0x38] sm:$0xff] %v147_v59 }
  0xbf   :  { %v176_v60 = vpop.f32.mrf.mxu2 }
  0xc0   :  { %190 = vst [vmem:[%s339_s2 + $0x40] sm:$0xff] %v176_v60 }
  0xc1   :  { %v121_v61 = vpop.f32.mrf.mxu3 }
  0xc2   :  { %191 = vst [vmem:[%s339_s2 + $0x48] sm:$0xff] %v121_v61  ;;  %v150_v62 = vpop.f32.mrf.mxu1 }
  0xc3   :  { %192 = vst [vmem:[%s339_s2 + $0x50] sm:$0xff] %v150_v62 }
  0xc7   :  { %v179_v63 = vpop.f32.mrf.mxu2 }
  0xc8   :  { %193 = vst [vmem:[%s339_s2 + $0x58] sm:$0xff] %v179_v63 }
  0xc9   :  { %198 = vsyncpa [#allocation3], 1 }
  0xca   :  { %199 = vsyncpa [#allocation5], 1 }

// kernel: transformer_encoder.6
= control target key start
LH: loop header
LB: loop body
LE: loop exit
PB: predicated region body
PF: predicated region fallthrough
CT: control target
= control target key end

     0   :  { %v245_v32 = vmov 128.0   ;;  %s381_s2 = inlined_call_operand.vmem [shape: f32[128,128], index: 2, kind: input, shape index: {}]   ;;  %s382_s0 = inlined_call_operand.vmem [shape: f32[32,128], index: 0, kind: input, shape index: {}]   ;;  %s383_s1 = inlined_call_operand.vmem [shape: f32[32,128], index: 1, kind: input, shape index: {}]   ;;  %s384_s3 = inlined_call_operand.vmem [shape: f32[1,128], index: 3, kind: input, shape index: {}]   ;;  %s385_s4 = inlined_call_operand.vmem [shape: f32[1,128], index: 4, kind: input, shape index: {}]   ;;  %s386_s5 = inlined_call_operand.vmem [shape: f32[32,128], index: 5, kind: output, shape index: {}]  }
   0x1   :  { %v39_v0 = vld [vmem:[%s381_s2 + $0x78] sm:$0xff]  ;;  %v38_v1 = vld [vmem:[%s381_s2 + $0x70] sm:$0xff]  ;;  %v37_v2 = vld [vmem:[%s381_s2 + $0x68] sm:$0xff]  ;;  %235 = vrcp.f32 %v245_v32 }
   0x2   :  { %44 = vmatpush.msra.mxu0 %v39_v0  ;;  %185 = vmatpush.msra.mxu2 %v39_v0  ;;  %v36_v3 = vld [vmem:[%s381_s2 + $0x60] sm:$0xff]  ;;  %v35_v4 = vld [vmem:[%s381_s2 + $0x58] sm:$0xff]  ;;  %v34_v5 = vld [vmem:[%s381_s2 + $0x50] sm:$0xff] }
   0x3   :  { %184 = vmatpush.msra.mxu1 %v39_v0  ;;  %186 = vmatpush.msra.mxu3 %v39_v0  ;;  %v33_v6 = vld [vmem:[%s381_s2 + $0x48] sm:$0xff]  ;;  %v32_v7 = vld [vmem:[%s381_s2 + $0x40] sm:$0xff]  ;;  %v31_v8 = vld [vmem:[%s381_s2 + $0x38] sm:$0xff] }
   0x4   :  { %45 = vmatpush.msra.mxu0 %v38_v1  ;;  %188 = vmatpush.msra.mxu2 %v38_v1  ;;  %v30_v9 = vld [vmem:[%s381_s2 + $0x30] sm:$0xff]  ;;  %v29_v10 = vld [vmem:[%s381_s2 + $0x28] sm:$0xff]  ;;  %v28_v11 = vld [vmem:[%s381_s2 + $0x20] sm:$0xff] }
   0x5   :  { %187 = vmatpush.msra.mxu1 %v38_v1  ;;  %189 = vmatpush.msra.mxu3 %v38_v1  ;;  %v27_v12 = vld [vmem:[%s381_s2 + $0x18] sm:$0xff]  ;;  %v26_v13 = vld [vmem:[%s381_s2 + $0x10] sm:$0xff]  ;;  %v25_v14 = vld [vmem:[%s381_s2 + $0x8] sm:$0xff] }
   0x6   :  { %46 = vmatpush.msra.mxu0 %v37_v2  ;;  %191 = vmatpush.msra.mxu2 %v37_v2  ;;  %v24_v15 = vld [vmem:[%s381_s2] sm:$0xff]  ;;  %v22_v17 = vld [vmem:[%s382_s0 + $0x10] sm:$0xff]  ;;  %v21_v18 = vld [vmem:[%s382_s0 + $0x8] sm:$0xff] }
   0x7   :  { %190 = vmatpush.msra.mxu1 %v37_v2  ;;  %192 = vmatpush.msra.mxu3 %v37_v2  ;;  %v20_v16 = vld [vmem:[%s382_s0] sm:$0xff]  ;;  %v23_v19 = vld [vmem:[%s382_s0 + $0x18] sm:$0xff]  ;;  %v42_v23 = vld [vmem:[%s383_s1 + $0x10] sm:$0xff]  ;;  %v236_v33 = vpop.eup %235 }
   0x8   :  { %47 = vmatpush.msra.mxu0 %v36_v3  ;;  %194 = vmatpush.msra.mxu2 %v36_v3  ;;  %v40_v20 = vld [vmem:[%s383_s1] sm:$0xff]  ;;  %v41_v24 = vld [vmem:[%s383_s1 + $0x8] sm:$0xff]  ;;  %v43_v29 = vld [vmem:[%s383_s1 + $0x18] sm:$0xff]  ;;  %v82_v34 = vmul.f32 128.0, %v236_v33  ;;  %vm86_vm0 = vweird.f32 %v236_v33 }
   0x9   :  { %193 = vmatpush.msra.mxu1 %v36_v3  ;;  %195 = vmatpush.msra.mxu3 %v36_v3 }
   0xa   :  { %48 = vmatpush.msra.mxu0 %v35_v4  ;;  %197 = vmatpush.msra.mxu2 %v35_v4  ;;  %v83_v35 = vsub.f32 1.0, %v82_v34 }
   0xb   :  { %196 = vmatpush.msra.mxu1 %v35_v4  ;;  %198 = vmatpush.msra.mxu3 %v35_v4 }
   0xc   :  { %49 = vmatpush.msra.mxu0 %v34_v5  ;;  %200 = vmatpush.msra.mxu2 %v34_v5  ;;  %v84_v36 = vmul.f32 %v236_v33, %v83_v35 }
   0xd   :  { %199 = vmatpush.msra.mxu1 %v34_v5  ;;  %201 = vmatpush.msra.mxu3 %v34_v5 }
   0xe   :  { %50 = vmatpush.msra.mxu0 %v33_v6  ;;  %203 = vmatpush.msra.mxu2 %v33_v6  ;;  %v85_v37 = vadd.f32 %v236_v33, %v84_v36 }
   0xf   :  { %202 = vmatpush.msra.mxu1 %v33_v6  ;;  %204 = vmatpush.msra.mxu3 %v33_v6 }
  0x10   :  { %51 = vmatpush.msra.mxu0 %v32_v7  ;;  %206 = vmatpush.msra.mxu2 %v32_v7  ;;  %v87_v38 = vsel %vm86_vm0, %v236_v33, %v85_v37 }
  0x11   :  { %205 = vmatpush.msra.mxu1 %v32_v7  ;;  %207 = vmatpush.msra.mxu3 %v32_v7 }
  0x12   :  { %52 = vmatpush.msra.mxu0 %v31_v8  ;;  %209 = vmatpush.msra.mxu2 %v31_v8 }
  0x13   :  { %208 = vmatpush.msra.mxu1 %v31_v8  ;;  %210 = vmatpush.msra.mxu3 %v31_v8 }
  0x14   :  { %53 = vmatpush.msra.mxu0 %v30_v9  ;;  %212 = vmatpush.msra.mxu2 %v30_v9 }
  0x15   :  { %211 = vmatpush.msra.mxu1 %v30_v9  ;;  %213 = vmatpush.msra.mxu3 %v30_v9 }
  0x16   :  { %54 = vmatpush.msra.mxu0 %v29_v10  ;;  %215 = vmatpush.msra.mxu2 %v29_v10 }
  0x17   :  { %214 = vmatpush.msra.mxu1 %v29_v10  ;;  %216 = vmatpush.msra.mxu3 %v29_v10 }
  0x18   :  { %55 = vmatpush.msra.mxu0 %v28_v11  ;;  %218 = vmatpush.msra.mxu2 %v28_v11 }
  0x19   :  { %217 = vmatpush.msra.mxu1 %v28_v11  ;;  %219 = vmatpush.msra.mxu3 %v28_v11 }
  0x1a   :  { %56 = vmatpush.msra.mxu0 %v27_v12  ;;  %221 = vmatpush.msra.mxu2 %v27_v12 }
  0x1b   :  { %220 = vmatpush.msra.mxu1 %v27_v12  ;;  %222 = vmatpush.msra.mxu3 %v27_v12 }
  0x1c   :  { %57 = vmatpush.msra.mxu0 %v26_v13  ;;  %224 = vmatpush.msra.mxu2 %v26_v13 }
  0x1d   :  { %223 = vmatpush.msra.mxu1 %v26_v13  ;;  %225 = vmatpush.msra.mxu3 %v26_v13 }
  0x1e   :  { %58 = vmatpush.msra.mxu0 %v25_v14  ;;  %227 = vmatpush.msra.mxu2 %v25_v14 }
  0x1f   :  { %226 = vmatpush.msra.mxu1 %v25_v14  ;;  %228 = vmatpush.msra.mxu3 %v25_v14  ;;  %v233_v14 = vld [vmem:[%s384_s3] ss:$0 sm:$0xff] }
  0x20   :  { %59 = vmatpush.msra.mxu0 %v24_v15  ;;  %230 = vmatpush.msra.mxu2 %v24_v15 }
  0x21   :  { %60 = vmatmul.f32.vlgmr.msra.gmra.mxu0 %v20_v16  ;;  %66 = vmatmul.f32.vlgmr.msra.gmra.mxu2 %v22_v17 }
  0x22   :  { %229 = vmatpush.msra.mxu1 %v24_v15  ;;  %231 = vmatpush.msra.mxu3 %v24_v15 }
  0x23   :  { %63 = vmatmul.f32.vlgmr.msra.gmra.mxu1 %v21_v18  ;;  %69 = vmatmul.f32.vlgmr.msra.gmra.mxu3 %v23_v19  ;;  %v234_v18 = vld [vmem:[%s385_s4] ss:$0 sm:$0xff] }
  0x9e   :  { %v61_v21 = vpop.f32.mrf.mxu0 }
  0x9f   :  { %v62_v22 = vadd.f32 %v61_v21, %v40_v20 }
  0xa0   :  { %v64_v25 = vpop.f32.mrf.mxu1 }
  0xa1   :  { %73 = vadd.xlane.f32.xlu0 %v62_v22  ;;  %v65_v28 = vadd.f32 %v64_v25, %v41_v24 }
  0xa4   :  { %v67_v26 = vpop.f32.mrf.mxu2 }
  0xa5   :  { %v68_v27 = vadd.f32 %v67_v26, %v42_v23 }
  0xa6   :  { %v70_v30 = vpop.f32.mrf.mxu3 }
  0xa7   :  { %77 = vadd.xlane.f32.xlu1 %v68_v27  ;;  %v71_v31 = vadd.f32 %v70_v30, %v43_v29 }
  0xa9   :  { %75 = vadd.xlane.f32.xlu0 %v65_v28 }
  0xaf   :  { %79 = vadd.xlane.f32.xlu1 %v71_v31 }
 0x114   :  { %v74_v39 = vpop.xlane.xlu0 %73 }
 0x115   :  { %v88_v40 = vmul.f32 %v87_v38, %v74_v39 }
 0x117   :  { %v92_v41 = vsub.f32 %v62_v22, %v88_v40 }
 0x119   :  { %v96_v42 = vmul.f32 %v92_v41, %v92_v41 }
 0x11a   :  { %v78_v43 = vpop.xlane.xlu1 %77 }
 0x11b   :  { %v90_v44 = vmul.f32 %v87_v38, %v78_v43  ;;  %100 = vadd.xlane.f32.xlu2 %v96_v42 }
 0x11c   :  { %v76_v45 = vpop.xlane.xlu0 %75 }
 0x11d   :  { %v348_v46 = vsub.f32 %v68_v27, %v90_v44  ;;  %v89_v47 = vmul.f32 %v87_v38, %v76_v45 }
 0x11f   :  { %v350_v48 = vsub.f32 %v65_v28, %v89_v47  ;;  %v98_v49 = vmul.f32 %v348_v46, %v348_v46 }
 0x121   :  { %104 = vadd.xlane.f32.xlu0 %v98_v49  ;;  %v97_v50 = vmul.f32 %v350_v48, %v350_v48 }
 0x122   :  { %v80_v51 = vpop.xlane.xlu1 %79 }
 0x123   :  { %v91_v52 = vmul.f32 %v87_v38, %v80_v51  ;;  %102 = vadd.xlane.f32.xlu2 %v97_v50 }
 0x125   :  { %v356_v53 = vsub.f32 %v71_v31, %v91_v52 }
 0x127   :  { %v99_v54 = vmul.f32 %v356_v53, %v356_v53 }
 0x129   :  { %106 = vadd.xlane.f32.xlu1 %v99_v54 }
 0x18e   :  { %v101_v55 = vpop.xlane.xlu2 %100 }
 0x18f   :  { %v108_v56 = vmul.f32 %v101_v55, %v87_v38 }
 0x191   :  { %v112_v57 = vadd.f32 1e-05, %v108_v56 }
 0x193   :  { %237 = vrsqrt.f32 %v112_v57  ;;  %vm122_vm2 = vweird.f32 %v112_v57 }
 0x194   :  { %v105_v58 = vpop.xlane.xlu0 %104 }
 0x195   :  { %v110_v59 = vmul.f32 %v105_v58, %v87_v38 }
 0x196   :  { %v103_v60 = vpop.xlane.xlu2 %102 }
 0x197   :  { %v114_v61 = vadd.f32 1e-05, %v110_v59  ;;  %v109_v62 = vmul.f32 %v103_v60, %v87_v38 }
 0x199   :  { %v238_v63 = vpop.eup %237  ;;  %239 = vrsqrt.f32 %v114_v61  ;;  %v113_v0 = vadd.f32 1e-05, %v109_v62  ;;  %vm142_vm5 = vweird.f32 %v114_v61 }
 0x19a   :  { %v117_v1 = vmul.f32 %v238_v63, %v112_v57  ;;  %vm123_vm1 = vweird.f32 %v238_v63 }
 0x19b   :  { %241 = vrsqrt.f32 %v113_v0  ;;  %vm124_vm3 = vmor %vm122_vm2, %vm123_vm1  ;;  %vm132_vm8 = vweird.f32 %v113_v0 }
 0x19c   :  { %v118_v2 = vmul.f32 %v238_v63, %v117_v1  ;;  %v107_v3 = vpop.xlane.xlu1 %106 }
 0x19d   :  { %v111_v4 = vmul.f32 %v107_v3, %v87_v38 }
 0x19e   :  { %v119_v5 = vmul.f32 0.5, %v118_v2 }
 0x19f   :  { %v240_v6 = vpop.eup %239  ;;  %v115_v7 = vadd.f32 1e-05, %v111_v4 }
 0x1a0   :  { %v120_v8 = vsub.f32 1.5, %v119_v5  ;;  %v137_v9 = vmul.f32 %v240_v6, %v114_v61  ;;  %vm143_vm4 = vweird.f32 %v240_v6 }
 0x1a1   :  { %v242_v10 = vpop.eup %241  ;;  %243 = vrsqrt.f32 %v115_v7  ;;  %vm144_vm7 = vmor %vm142_vm5, %vm143_vm4  ;;  %vm152_vm11 = vweird.f32 %v115_v7 }
 0x1a2   :  { %v121_v11 = vmul.f32 %v238_v63, %v120_v8  ;;  %v138_v12 = vmul.f32 %v240_v6, %v137_v9  ;;  %v127_v13 = vmul.f32 %v242_v10, %v113_v0  ;;  %vm133_vm6 = vweird.f32 %v242_v10 }
 0x1a3   :  { %vm134_vm9 = vmor %vm132_vm8, %vm133_vm6 }
 0x1a4   :  { %v125_v15 = vsel %vm124_vm3, %v238_v63, %v121_v11  ;;  %v139_v16 = vmul.f32 0.5, %v138_v12  ;;  %v128_v17 = vmul.f32 %v242_v10, %v127_v13 }
 0x1a5   :  { %v156_v19 = vmul.f32 %v125_v15, %v92_v41 }
 0x1a6   :  { %v140_v20 = vsub.f32 1.5, %v139_v16  ;;  %v129_v21 = vmul.f32 0.5, %v128_v17 }
 0x1a7   :  { %v244_v22 = vpop.eup %243  ;;  %v164_v23 = vmul.f32 %v233_v14, %v156_v19 }
 0x1a8   :  { %v141_v24 = vmul.f32 %v240_v6, %v140_v20  ;;  %v130_v25 = vsub.f32 1.5, %v129_v21  ;;  %v147_v26 = vmul.f32 %v244_v22, %v115_v7  ;;  %vm153_vm10 = vweird.f32 %v244_v22 }
 0x1a9   :  { %v172_v27 = vadd.f32 %v234_v18, %v164_v23  ;;  %vm154_vm12 = vmor %vm152_vm11, %vm153_vm10 }
 0x1aa   :  { %v145_v28 = vsel %vm144_vm7, %v240_v6, %v141_v24  ;;  %v131_v29 = vmul.f32 %v242_v10, %v130_v25  ;;  %v148_v30 = vmul.f32 %v244_v22, %v147_v26 }
 0x1ab   :  { %176 = vst [vmem:[%s386_s5] sm:$0xff] %v172_v27  ;;  %v158_v31 = vmul.f32 %v145_v28, %v348_v46 }
 0x1ac   :  { %v135_v32 = vsel %vm134_vm9, %v242_v10, %v131_v29  ;;  %v149_v33 = vmul.f32 0.5, %v148_v30 }
 0x1ad   :  { %v166_v34 = vmul.f32 %v233_v14, %v158_v31  ;;  %v157_v35 = vmul.f32 %v135_v32, %v350_v48 }
 0x1ae   :  { %v150_v36 = vsub.f32 1.5, %v149_v33 }
 0x1af   :  { %v174_v37 = vadd.f32 %v234_v18, %v166_v34  ;;  %v165_v38 = vmul.f32 %v233_v14, %v157_v35 }
 0x1b0   :  { %v151_v39 = vmul.f32 %v244_v22, %v150_v36 }
 0x1b1   :  { %178 = vst [vmem:[%s386_s5 + $0x10] sm:$0xff] %v174_v37  ;;  %v173_v40 = vadd.f32 %v234_v18, %v165_v38 }
 0x1b2   :  { %v155_v41 = vsel %vm154_vm12, %v244_v22, %v151_v39 }
 0x1b3   :  { %177 = vst [vmem:[%s386_s5 + $0x8] sm:$0xff] %v173_v40  ;;  %v159_v42 = vmul.f32 %v155_v41, %v356_v53 }
 0x1b5   :  { %v167_v43 = vmul.f32 %v233_v14, %v159_v42 }
 0x1b7   :  { %v175_v44 = vadd.f32 %v234_v18, %v167_v43 }
 0x1b9   :  { %179 = vst [vmem:[%s386_s5 + $0x18] sm:$0xff] %v175_v44 }

// kernel: transformer_encoder.5
= control target key start
LH: loop header
LB: loop body
LE: loop exit
PB: predicated region body
PF: predicated region fallthrough
CT: control target
= control target key end

     0   :  { %s822_s18 = smov [#allocation3]   ;;  %s954_s0 = inlined_call_operand.vmem [shape: s32[2], index: 0, kind: input, shape index: {}]   ;;  %s955_s1 = inlined_call_operand.vmem [shape: f32[2,4,16,32], index: 1, kind: input, shape index: {}]   ;;  %s956_s2 = inlined_call_operand.vmem [shape: f32[2,4,16,32], index: 2, kind: input, shape index: {}]   ;;  %s957_s3 = inlined_call_operand.vmem [shape: f32[2,4,16,32], index: 3, kind: input, shape index: {}]   ;;  %s958_s4 = inlined_call_operand.vmem [shape: f32[2,4,16,32], index: 4, kind: output, shape index: {}]  }
   0x1   :  { %s10_s17 = sshll.u32 %s954_s0, 4  ;;  %s11_s17 = int_to_ptr.vmem [resolvable:$true] %s10_s17 }
   0x2   :  { %13 = dma.vmem_to_smem %s11_s17, 16, %s822_s18, [#allocation2] }
   0x3   :  { %816 = dma.done.wait [#allocation2], 16 }
   0x4   :  { %817 = vsyncadd [#allocation2], 4294967280 }
   0x5   :  { %16 = sfence }
   0x6   :  { %s852_s19 = smov 0  }
   0x7 LB: > { %s858_s20 = sadd.s32 4294967295, %s820_s19   ;;  %p717_p0 = scmp.ge.s32.totalorder %s820_s19, 1  ;;  %s820_s19 = sphi %s852_s19, %s22_s19  }
   0x8   : > { %p166_p1 = scmp.lt.s32.totalorder %s820_s19, 3 }
   0xa   : > { %p167_p2 = pnand %p717_p0, %p166_p1 }
   0xb   : > { %p200_p3 = scmp.lt.s32.totalorder (!%p167_p2), %s858_s20, 1  ;;  %s220_s28 = sld [smem:[#allocation3 + %s858_s20]] (!%p167_p2) }
   0xc   : > { %170 = sbr.rel (%p167_p2) target bundleno = 572 (0x23c), region = 32 }
  0x11   : > { %s201_s0 = scalar_select %p200_p3, %s858_s20, 1  ;;  %vm245_vm0 = vcmask 261120   ;;  %v394_v16 = vlaneseq  ;;  %v399_v19 = vstv %s220_s28  ;;  %v823_v20 = vmov 0.0  }
  0x12   : > { %vm421_vm5 = vcmask 130048  }
  0x13   : > { %s864_s21 = sshll.u32 %s201_s0, 6  ;;  %v395_v17 = vshrl.u32 %v394_v16, 7  ;;  %v398_v18 = vand.u32 127, %v394_v16 }
  0x14   : > { %s209_s24 = scalar_lea.vmem %s956_s2, %s864_s21  ;;  %s204_s27 = scalar_lea.vmem %s955_s1, %s864_s21 }
  0x15   : > { %v230_v0 = vld [vmem:[%s209_s24 + $0x8] sm:$0xff]  ;;  %v229_v2 = vld [vmem:[%s209_s24] sm:$0xff]  ;;  %v232_v4 = vld [vmem:[%s209_s24 + $0x18] sm:$0xff]  ;;  %vm400_vm1 = vcmp.lt.s32.totalorder %v395_v17, %v399_v19  ;;  %vm402_vm2 = vcmp.lt.s32.totalorder %v398_v18, %v399_v19  ;;  %v396_v23 = vadd.s32 8, %v395_v17  ;;  %s214_s5 = scalar_lea.vmem %s957_s3, %s864_s21  ;;  %s219_s8 = scalar_lea.vmem %s958_s4, %s864_s21 }
  0x16   : > { %v234_v1 = vld [vmem:[%s209_s24 + $0x28] sm:$0xff]  ;;  %726 = vmatpush.xpose.msk.msra.mxu0 %vm245_vm0, %v230_v0  ;;  %v233_v3 = vld [vmem:[%s209_s24 + $0x20] sm:$0xff]  ;;  %v236_v5 = vld [vmem:[%s209_s24 + $0x38] sm:$0xff]  ;;  %730 = vmatpush.xpose.msk.msra.mxu1 %vm245_vm0, %v232_v4 }
  0x17   : > { %734 = vmatpush.xpose.msk.msra.mxu2 %vm245_vm0, %v234_v1  ;;  %738 = vmatpush.xpose.msk.msra.mxu3 %vm245_vm0, %v236_v5  ;;  %v231_v6 = vld [vmem:[%s209_s24 + $0x10] sm:$0xff]  ;;  %v221_v8 = vld [vmem:[%s204_s27] sm:$0xff]  ;;  %v226_v12 = vld [vmem:[%s204_s27 + $0x28] sm:$0xff]  ;;  %vm401_vm4 = vcmp.lt.s32.totalorder %v396_v23, %v399_v19 }
  0x18   : > { %v235_v7 = vld [vmem:[%s209_s24 + $0x30] sm:$0xff]  ;;  %v225_v9 = vld [vmem:[%s204_s27 + $0x20] sm:$0xff]  ;;  %v222_v13 = vld [vmem:[%s204_s27 + $0x8] sm:$0xff] }
  0x19   : > { %v223_v10 = vld [vmem:[%s204_s27 + $0x10] sm:$0xff]  ;;  %v224_v14 = vld [vmem:[%s204_s27 + $0x18] sm:$0xff]  ;;  %vm403_vm3 = vmand %vm400_vm1, %vm402_vm2 }
  0x1a   : > { %727 = vmatpush.xpose.msk.msra.mxu0 %vm245_vm0, %v229_v2  ;;  %731 = vmatpush.xpose.msk.msra.mxu1 %vm245_vm0, %v231_v6  ;;  %v227_v11 = vld [vmem:[%s204_s27 + $0x30] sm:$0xff]  ;;  %v228_v15 = vld [vmem:[%s204_s27 + $0x38] sm:$0xff]  ;;  %v742_v21 = vsel %vm403_vm3, 1.0, %v823_v20  ;;  %vm404_vm6 = vmand %vm401_vm4, %vm402_vm2 }
  0x1b   : > { %735 = vmatpush.xpose.msk.msra.mxu2 %vm245_vm0, %v233_v3  ;;  %739 = vmatpush.xpose.msk.msra.mxu3 %vm245_vm0, %v235_v7  ;;  %v409_v22 = vsub.f32 1.0, %v742_v21  ;;  %v743_v32 = vsel %vm404_vm6, 1.0, %v823_v20 }
  0x1c   : > { %v410_v38 = vsub.f32 1.0, %v743_v32 }
  0x1d   : > { %728 = vmatmul.msk.f32.vlgmr.msra.gmra.mxu0 %vm245_vm0, %v221_v8  ;;  %732 = vmatmul.msk.f32.vlgmr.msra.gmra.mxu1 %vm245_vm0, %v223_v10  ;;  %v411_v24 = vmul.f32 -100000.0, %v409_v22 }
  0x1e   : > { %736 = vmatmul.msk.f32.vlgmr.msra.gmra.mxu2 %vm245_vm0, %v225_v9  ;;  %740 = vmatmul.msk.f32.vlgmr.msra.gmra.mxu3 %vm245_vm0, %v227_v11  ;;  %v412_v44 = vmul.f32 -100000.0, %v410_v38  ;;  %v242_v38 = vld [vmem:[%s214_s5 + $0x28] sm:$0xff] }
  0x1f   : > { %588 = vmatpush.msrb.mxu2 %v242_v38 }
  0x25   : > { %729 = vmatmul.msk.f32.gmra.mxu0 %vm245_vm0, %v222_v13  ;;  %733 = vmatmul.msk.f32.gmra.mxu1 %vm245_vm0, %v224_v14 }
  0x26   : > { %737 = vmatmul.msk.f32.gmra.mxu2 %vm245_vm0, %v226_v12  ;;  %741 = vmatmul.msk.f32.gmra.mxu3 %vm245_vm0, %v228_v15 }
  0x9a   : > { %v275_v25 = vpop.f32.mrf.mxu0  ;;  %v310_v27 = vpop.f32.mrf.mxu1 }
  0x9b   : > { %v386_v26 = vmul.f32 0.17677669, %v275_v25  ;;  %v388_v29 = vmul.f32 0.17677669, %v310_v27 }
  0x9d   : > { %v413_v28 = vadd.f32 %v411_v24, %v386_v26  ;;  %v415_v34 = vadd.f32 %v411_v24, %v388_v29 }
  0x9f   : > { %v422_v30 = vsel %vm421_vm5, %v413_v28, -inf  ;;  %v428_v41 = vsel %vm421_vm5, %v415_v34, -inf }
  0xa0   : > { %423 = vmax.xlane.f32.xlu1 %v422_v30 }
  0xa1   : > { %v345_v31 = vpop.f32.mrf.mxu2  ;;  %v380_v35 = vpop.f32.mrf.mxu3 }
  0xa2   : > { %v390_v33 = vmul.f32 0.17677669, %v345_v31  ;;  %v392_v37 = vmul.f32 0.17677669, %v380_v35  ;;  %v313_v39 = vpop.f32.mrf.mxu1  ;;  %v278_v46 = vpop.f32.mrf.mxu0 }
  0xa3   : > { %v389_v42 = vmul.f32 0.17677669, %v313_v39  ;;  %v387_v53 = vmul.f32 0.17677669, %v278_v46  ;;  %v244_v39 = vld [vmem:[%s214_s5 + $0x38] sm:$0xff] }
  0xa4   : > { %v417_v36 = vadd.f32 %v411_v24, %v390_v33  ;;  %v419_v43 = vadd.f32 %v411_v24, %v392_v37  ;;  %v237_v37 = vld [vmem:[%s214_s5] sm:$0xff]  ;;  %617 = vmatpush.msrb.mxu3 %v244_v39 }
  0xa5   : > { %v416_v48 = vadd.f32 %v412_v44, %v389_v42  ;;  %v414_v57 = vadd.f32 %v412_v44, %v387_v53  ;;  %v243_v42 = vld [vmem:[%s214_s5 + $0x30] sm:$0xff] }
  0xa6   : > { %v434_v40 = vsel %vm421_vm5, %v417_v36, -inf  ;;  %v440_v50 = vsel %vm421_vm5, %v419_v43, -inf  ;;  %618 = vmatpush.msrb.mxu3 %v243_v42 }
  0xa7   : > { %435 = vmax.xlane.f32.xlu0 %v434_v40  ;;  %v431_v55 = vsel %vm421_vm5, %v416_v48, -inf  ;;  %v425_v59 = vsel %vm421_vm5, %v414_v57, -inf  ;;  %v241_v40 = vld [vmem:[%s214_s5 + $0x20] sm:$0xff] }
  0xa8   : > { %429 = vmax.xlane.f32.xlu1 %v428_v41  ;;  %589 = vmatpush.msrb.mxu2 %v241_v40  ;;  %v240_v41 = vld [vmem:[%s214_s5 + $0x18] sm:$0xff] }
  0xa9   : > { %v348_v45 = vpop.f32.mrf.mxu2  ;;  %v383_v49 = vpop.f32.mrf.mxu3  ;;  %559 = vmatpush.msrb.mxu1 %v240_v41 }
  0xaa   : > { %v391_v47 = vmul.f32 0.17677669, %v348_v45  ;;  %v393_v52 = vmul.f32 0.17677669, %v383_v49 }
  0xac   : > { %v418_v51 = vadd.f32 %v412_v44, %v391_v47  ;;  %v420_v56 = vadd.f32 %v412_v44, %v393_v52 }
  0xae   : > { %v437_v54 = vsel %vm421_vm5, %v418_v51, -inf  ;;  %v443_v58 = vsel %vm421_vm5, %v420_v56, -inf }
  0xaf   : > { %441 = vmax.xlane.f32.xlu0 %v440_v50  ;;  %438 = vmax.xlane.f32.xlu2 %v437_v54 }
  0xb0   : > { %432 = vmax.xlane.f32.xlu1 %v431_v55 }
  0xb7   : > { %444 = vmax.xlane.f32.xlu2 %v443_v58  ;;  %426 = vmax.xlane.f32.xlu0 %v425_v59 }
 0x113   : > { %v424_v60 = vpop.xlane.xlu1 %423 }
 0x114   : > { %v446_v61 = vsub.f32 %v413_v28, %v424_v60 }
 0x116   : > { %v454_v62 = vmul.f32 1.442695, %v446_v61 }
 0x118   : > { %768 = vpow2.f32 %v454_v62 }
 0x11a   : > { %v436_v63 = vpop.xlane.xlu0 %435 }
 0x11b   : > { %v450_v0 = vsub.f32 %v417_v36, %v436_v63  ;;  %v430_v1 = vpop.xlane.xlu1 %429  ;;  %v238_v36 = vld [vmem:[%s214_s5 + $0x8] sm:$0xff] }
 0x11c   : > { %v448_v3 = vsub.f32 %v415_v34, %v430_v1  ;;  %530 = vmatpush.msrb.mxu0 %v238_v36 }
 0x11d   : > { %v462_v2 = vmul.f32 1.442695, %v450_v0 }
 0x11e   : > { %v899_v4 = vpop.eup %768  ;;  %v458_v6 = vmul.f32 1.442695, %v448_v3  ;;  %531 = vmatpush.msrb.mxu0 %v237_v37 }
 0x11f   : > { %770 = vpow2.f32 %v462_v2  ;;  %v470_v5 = vsel %vm421_vm5, %v899_v4, 0.0 }
 0x120   : > { %471 = vadd.xlane.f32.xlu1 %v470_v5  ;;  %772 = vpow2.f32 %v458_v6 }
 0x122   : > { %v442_v7 = vpop.xlane.xlu0 %441  ;;  %v439_v8 = vpop.xlane.xlu2 %438 }
 0x123   : > { %v452_v9 = vsub.f32 %v419_v43, %v442_v7  ;;  %v451_v12 = vsub.f32 %v418_v51, %v439_v8  ;;  %v433_v15 = vpop.xlane.xlu1 %432  ;;  %v239_v43 = vld [vmem:[%s214_s5 + $0x10] sm:$0xff] }
 0x124   : > { %v449_v22 = vsub.f32 %v416_v48, %v433_v15  ;;  %560 = vmatpush.msrb.mxu1 %v239_v43 }
 0x125   : > { %v903_v10 = vpop.eup %770  ;;  %v466_v11 = vmul.f32 1.442695, %v452_v9  ;;  %v464_v14 = vmul.f32 1.442695, %v451_v12 }
 0x126   : > { %v482_v13 = vsel %vm421_vm5, %v903_v10, 0.0  ;;  %v907_v18 = vpop.eup %772  ;;  %v460_v27 = vmul.f32 1.442695, %v449_v22 }
 0x127   : > { %774 = vpow2.f32 %v466_v11  ;;  %483 = vadd.xlane.f32.xlu2 %v482_v13  ;;  %v476_v25 = vsel %vm421_vm5, %v907_v18, 0.0 }
 0x128   : > { %776 = vpow2.f32 %v464_v14 }
 0x12a   : > { %v445_v16 = vpop.xlane.xlu2 %444  ;;  %v427_v17 = vpop.xlane.xlu0 %426 }
 0x12b   : > { %v453_v19 = vsub.f32 %v420_v56, %v445_v16  ;;  %v447_v20 = vsub.f32 %v414_v57, %v427_v17 }
 0x12d   : > { %v909_v21 = vpop.eup %774  ;;  %v468_v23 = vmul.f32 1.442695, %v453_v19  ;;  %v456_v24 = vmul.f32 1.442695, %v447_v20 }
 0x12e   : > { %v488_v26 = vsel %vm421_vm5, %v909_v21, 0.0  ;;  %v915_v28 = vpop.eup %776 }
 0x12f   : > { %778 = vpow2.f32 %v468_v23  ;;  %477 = vadd.xlane.f32.xlu2 %v476_v25  ;;  %489 = vadd.xlane.f32.xlu0 %v488_v26  ;;  %v485_v32 = vsel %vm421_vm5, %v915_v28, 0.0 }
 0x130   : > { %780 = vpow2.f32 %v456_v24 }
 0x131   : > { %782 = vpow2.f32 %v460_v27 }
 0x135   : > { %v779_v29 = vpop.eup %778 }
 0x136   : > { %v781_v30 = vpop.eup %780  ;;  %v491_v31 = vsel %vm421_vm5, %v779_v29, 0.0 }
 0x137   : > { %492 = vadd.xlane.f32.xlu1 %v491_v31  ;;  %486 = vadd.xlane.f32.xlu0 %v485_v32  ;;  %v473_v33 = vsel %vm421_vm5, %v781_v30, 0.0  ;;  %v783_v34 = vpop.eup %782 }
 0x138   : > { %474 = vadd.xlane.f32.xlu2 %v473_v33  ;;  %v479_v35 = vsel %vm421_vm5, %v783_v34, 0.0 }
 0x13f   : > { %480 = vadd.xlane.f32.xlu0 %v479_v35 }
 0x193   : > { %v472_v44 = vpop.xlane.xlu1 %471 }
 0x194   : > { %784 = vrcp.f32 %v472_v44 }
 0x19a   : > { %v484_v45 = vpop.xlane.xlu2 %483  ;;  %v785_v46 = vpop.eup %784 }
 0x19b   : > { %786 = vrcp.f32 %v484_v45  ;;  %v502_v47 = vmul.f32 %v785_v46, %v899_v4 }
 0x19d   : > { %744 = vmatmul.msk.f32.vlgmr.msrb.gmra.mxu0 %vm421_vm5, %v502_v47 }
 0x1a1   : > { %v787_v48 = vpop.eup %786 }
 0x1a2   : > { %v478_v49 = vpop.xlane.xlu2 %477  ;;  %v490_v50 = vpop.xlane.xlu0 %489  ;;  %v506_v51 = vmul.f32 %v787_v48, %v903_v10 }
 0x1a3   : > { %788 = vrcp.f32 %v478_v49 }
 0x1a4   : > { %790 = vrcp.f32 %v490_v50  ;;  %748 = vmatmul.msk.f32.vlgmr.msrb.gmra.mxu2 %vm421_vm5, %v506_v51 }
 0x1a9   : > { %v789_v52 = vpop.eup %788 }
 0x1aa   : > { %v791_v53 = vpop.eup %790  ;;  %v493_v54 = vpop.xlane.xlu1 %492  ;;  %v504_v56 = vmul.f32 %v789_v52, %v907_v18 }
 0x1ab   : > { %v487_v55 = vpop.xlane.xlu0 %486  ;;  %792 = vrcp.f32 %v493_v54  ;;  %v475_v57 = vpop.xlane.xlu2 %474  ;;  %v508_v58 = vmul.f32 %v791_v53, %v909_v21 }
 0x1ac   : > { %794 = vrcp.f32 %v475_v57  ;;  %746 = vmatmul.msk.f32.vlgmr.msrb.gmra.mxu1 %vm421_vm5, %v504_v56 }
 0x1ad   : > { %796 = vrcp.f32 %v487_v55  ;;  %750 = vmatmul.msk.f32.vlgmr.msrb.gmra.mxu3 %vm421_vm5, %v508_v58 }
 0x1b1   : > { %v793_v59 = vpop.eup %792 }
 0x1b2   : > { %v795_v60 = vpop.eup %794  ;;  %v509_v62 = vmul.f32 %v793_v59, %v779_v29 }
 0x1b3   : > { %v481_v61 = vpop.xlane.xlu0 %480  ;;  %v797_v63 = vpop.eup %796  ;;  %v503_v0 = vmul.f32 %v795_v60, %v781_v30 }
 0x1b4   : > { %798 = vrcp.f32 %v481_v61  ;;  %v507_v1 = vmul.f32 %v797_v63, %v915_v28 }
 0x1b5   : > { %745 = vmatmul.msk.f32.gmra.mxu0 %vm421_vm5, %v503_v0  ;;  %751 = vmatmul.msk.f32.gmra.mxu3 %vm421_vm5, %v509_v62 }
 0x1b6   : > { %749 = vmatmul.msk.f32.gmra.mxu2 %vm421_vm5, %v507_v1 }
 0x1ba   : > { %v799_v2 = vpop.eup %798 }
 0x1bb   : > { %v505_v3 = vmul.f32 %v799_v2, %v783_v34 }
 0x1bd   : > { %747 = vmatmul.msk.f32.gmra.mxu1 %vm421_vm5, %v505_v3 }
 0x21a   : > { %v533_v4 = vpop.f32.mrf.mxu0 }
 0x21b   : > { %626 = vst.msk [vmem:[%s219_s8] sm:$0xff] %vm245_vm0, %v533_v4 }
 0x227   : > { %v591_v5 = vpop.f32.mrf.mxu2 }
 0x228   : > { %630 = vst.msk [vmem:[%s219_s8 + $0x20] sm:$0xff] %vm245_vm0, %v591_v5 }
 0x229   : > { %v562_v6 = vpop.f32.mrf.mxu1 }
 0x22a   : > { %628 = vst.msk [vmem:[%s219_s8 + $0x10] sm:$0xff] %vm245_vm0, %v562_v6 }
 0x230   : > { %v620_v7 = vpop.f32.mrf.mxu3 }
 0x231   : > { %632 = vst.msk [vmem:[%s219_s8 + $0x30] sm:$0xff] %vm245_vm0, %v620_v7 }
 0x232   : > { %v536_v8 = vpop.f32.mrf.mxu0 }
 0x233   : > { %627 = vst.msk [vmem:[%s219_s8 + $0x8] sm:$0xff] %vm245_vm0, %v536_v8 }
 0x238   : > { %v623_v9 = vpop.f32.mrf.mxu3 }
 0x239   : > { %v594_v10 = vpop.f32.mrf.mxu2  ;;  %633 = vst.msk [vmem:[%s219_s8 + $0x38] sm:$0xff] %vm245_vm0, %v623_v9 }
 0x23a   : > { %v565_v11 = vpop.f32.mrf.mxu1  ;;  %631 = vst.msk [vmem:[%s219_s8 + $0x28] sm:$0xff] %vm245_vm0, %v594_v10 }
 0x23b   : > { %629 = vst.msk [vmem:[%s219_s8 + $0x18] sm:$0xff] %vm245_vm0, %v565_v11 }
 0x23c PF: > { %s22_s19 = sadd.s32 1, %s820_s19  }
 0x23d   : > { %p19_p4 = scmp.ge.s32.totalorder %s22_s19, 4  }
 0x23f   :  { %21 = sbr.rel (!%p19_p4) target bundleno = 7 (0x7), region = 68 }

// kernel: transformer_encoder.7
= control target key start
LH: loop header
LB: loop body
LE: loop exit
PB: predicated region body
PF: predicated region fallthrough
CT: control target
= control target key end

     0   :  { %s1086_s0 = inlined_call_operand.vmem [shape: f32[32,128], index: 0, kind: input, shape index: {}]   ;;  %s1087_s1 = inlined_call_operand.vmem [shape: f32[128,512], index: 1, kind: input, shape index: {}]   ;;  %s1088_s2 = inlined_call_operand.vmem [shape: f32[1,512], index: 2, kind: input, shape index: {}]   ;;  %s1089_s3 = inlined_call_operand.vmem [shape: f32[512,128], index: 3, kind: input, shape index: {}]   ;;  %s1090_s4 = inlined_call_operand.vmem [shape: f32[1,128], index: 4, kind: input, shape index: {}]   ;;  %s1091_s5 = inlined_call_operand.vmem [shape: f32[1,128], index: 5, kind: input, shape index: {}]   ;;  %s1092_s6 = inlined_call_operand.vmem [shape: f32[1,128], index: 6, kind: input, shape index: {}]   ;;  %s1093_s7 = inlined_call_operand.hbm [shape: f32[32,128], index: 7, kind: output, shape index: {}]  }
   0x1   :  { %v93_v0 = vld [vmem:[%s1087_s1 + $0x1f0] sm:$0xff]  ;;  %v94_v2 = vld [vmem:[%s1087_s1 + $0x1f8] sm:$0xff]  ;;  %v91_v6 = vld [vmem:[%s1087_s1 + $0x1e0] sm:$0xff] }
   0x2   :  { %v89_v1 = vld [vmem:[%s1087_s1 + $0x1d0] sm:$0xff]  ;;  %163 = vmatpush.msra.mxu2 %v93_v0  ;;  %192 = vmatpush.msra.mxu3 %v94_v2  ;;  %v90_v3 = vld [vmem:[%s1087_s1 + $0x1d8] sm:$0xff]  ;;  %v87_v7 = vld [vmem:[%s1087_s1 + $0x1c0] sm:$0xff] }
   0x3   :  { %v85_v4 = vld [vmem:[%s1087_s1 + $0x1b0] sm:$0xff]  ;;  %v86_v5 = vld [vmem:[%s1087_s1 + $0x1b8] sm:$0xff]  ;;  %v92_v8 = vld [vmem:[%s1087_s1 + $0x1e8] sm:$0xff]  ;;  %105 = vmatpush.msra.mxu0 %v91_v6 }
   0x4   :  { %164 = vmatpush.msra.mxu2 %v89_v1  ;;  %193 = vmatpush.msra.mxu3 %v90_v3  ;;  %v81_v9 = vld [vmem:[%s1087_s1 + $0x190] sm:$0xff]  ;;  %v82_v10 = vld [vmem:[%s1087_s1 + $0x198] sm:$0xff]  ;;  %v83_v11 = vld [vmem:[%s1087_s1 + $0x1a0] sm:$0xff] }
   0x5   :  { %134 = vmatpush.msra.mxu1 %v92_v8  ;;  %v88_v12 = vld [vmem:[%s1087_s1 + $0x1c8] sm:$0xff]  ;;  %v77_v13 = vld [vmem:[%s1087_s1 + $0x170] sm:$0xff]  ;;  %106 = vmatpush.msra.mxu0 %v87_v7  ;;  %v78_v14 = vld [vmem:[%s1087_s1 + $0x178] sm:$0xff] }
   0x6   :  { %165 = vmatpush.msra.mxu2 %v85_v4  ;;  %194 = vmatpush.msra.mxu3 %v86_v5  ;;  %v84_v15 = vld [vmem:[%s1087_s1 + $0x1a8] sm:$0xff]  ;;  %v79_v16 = vld [vmem:[%s1087_s1 + $0x180] sm:$0xff]  ;;  %v73_v18 = vld [vmem:[%s1087_s1 + $0x150] sm:$0xff] }
   0x7   :  { %135 = vmatpush.msra.mxu1 %v88_v12  ;;  %v80_v17 = vld [vmem:[%s1087_s1 + $0x188] sm:$0xff]  ;;  %107 = vmatpush.msra.mxu0 %v83_v11  ;;  %v74_v19 = vld [vmem:[%s1087_s1 + $0x158] sm:$0xff]  ;;  %v75_v20 = vld [vmem:[%s1087_s1 + $0x160] sm:$0xff] }
   0x8   :  { %166 = vmatpush.msra.mxu2 %v81_v9  ;;  %195 = vmatpush.msra.mxu3 %v82_v10  ;;  %v76_v21 = vld [vmem:[%s1087_s1 + $0x168] sm:$0xff]  ;;  %v69_v22 = vld [vmem:[%s1087_s1 + $0x130] sm:$0xff]  ;;  %v70_v23 = vld [vmem:[%s1087_s1 + $0x138] sm:$0xff] }
   0x9   :  { %136 = vmatpush.msra.mxu1 %v84_v15  ;;  %108 = vmatpush.msra.mxu0 %v79_v16  ;;  %v71_v24 = vld [vmem:[%s1087_s1 + $0x140] sm:$0xff]  ;;  %v72_v25 = vld [vmem:[%s1087_s1 + $0x148] sm:$0xff]  ;;  %v65_v26 = vld [vmem:[%s1087_s1 + $0x110] sm:$0xff] }
   0xa   :  { %167 = vmatpush.msra.mxu2 %v77_v13  ;;  %196 = vmatpush.msra.mxu3 %v78_v14  ;;  %v66_v27 = vld [vmem:[%s1087_s1 + $0x118] sm:$0xff]  ;;  %v67_v28 = vld [vmem:[%s1087_s1 + $0x120] sm:$0xff]  ;;  %v68_v29 = vld [vmem:[%s1087_s1 + $0x128] sm:$0xff] }
   0xb   :  { %137 = vmatpush.msra.mxu1 %v80_v17  ;;  %109 = vmatpush.msra.mxu0 %v75_v20  ;;  %v61_v30 = vld [vmem:[%s1087_s1 + $0xf0] sm:$0xff]  ;;  %v62_v31 = vld [vmem:[%s1087_s1 + $0xf8] sm:$0xff]  ;;  %v63_v32 = vld [vmem:[%s1087_s1 + $0x100] sm:$0xff] }
   0xc   :  { %168 = vmatpush.msra.mxu2 %v73_v18  ;;  %197 = vmatpush.msra.mxu3 %v74_v19  ;;  %v64_v33 = vld [vmem:[%s1087_s1 + $0x108] sm:$0xff]  ;;  %v57_v34 = vld [vmem:[%s1087_s1 + $0xd0] sm:$0xff]  ;;  %v58_v35 = vld [vmem:[%s1087_s1 + $0xd8] sm:$0xff] }
   0xd   :  { %138 = vmatpush.msra.mxu1 %v76_v21  ;;  %110 = vmatpush.msra.mxu0 %v71_v24  ;;  %v59_v36 = vld [vmem:[%s1087_s1 + $0xe0] sm:$0xff]  ;;  %v60_v37 = vld [vmem:[%s1087_s1 + $0xe8] sm:$0xff]  ;;  %v53_v38 = vld [vmem:[%s1087_s1 + $0xb0] sm:$0xff] }
   0xe   :  { %169 = vmatpush.msra.mxu2 %v69_v22  ;;  %198 = vmatpush.msra.mxu3 %v70_v23  ;;  %v54_v39 = vld [vmem:[%s1087_s1 + $0xb8] sm:$0xff]  ;;  %v55_v40 = vld [vmem:[%s1087_s1 + $0xc0] sm:$0xff]  ;;  %v56_v41 = vld [vmem:[%s1087_s1 + $0xc8] sm:$0xff] }
   0xf   :  { %139 = vmatpush.msra.mxu1 %v72_v25  ;;  %111 = vmatpush.msra.mxu0 %v67_v28  ;;  %v49_v42 = vld [vmem:[%s1087_s1 + $0x90] sm:$0xff]  ;;  %v50_v44 = vld [vmem:[%s1087_s1 + $0x98] sm:$0xff]  ;;  %v51_v46 = vld [vmem:[%s1087_s1 + $0xa0] sm:$0xff] }
  0x10   :  { %170 = vmatpush.msra.mxu2 %v65_v26  ;;  %199 = vmatpush.msra.mxu3 %v66_v27  ;;  %v45_v43 = vld [vmem:[%s1087_s1 + $0x70] sm:$0xff]  ;;  %v46_v45 = vld [vmem:[%s1087_s1 + $0x78] sm:$0xff]  ;;  %v52_v47 = vld [vmem:[%s1087_s1 + $0xa8] sm:$0xff] }
  0x11   :  { %140 = vmatpush.msra.mxu1 %v68_v29  ;;  %112 = vmatpush.msra.mxu0 %v63_v32  ;;  %v47_v48 = vld [vmem:[%s1087_s1 + $0x80] sm:$0xff]  ;;  %v48_v49 = vld [vmem:[%s1087_s1 + $0x88] sm:$0xff] }
  0x12   :  { %171 = vmatpush.msra.mxu2 %v61_v30  ;;  %200 = vmatpush.msra.mxu3 %v62_v31 }
  0x13   :  { %141 = vmatpush.msra.mxu1 %v64_v33  ;;  %113 = vmatpush.msra.mxu0 %v59_v36 }
  0x14   :  { %172 = vmatpush.msra.mxu2 %v57_v34  ;;  %201 = vmatpush.msra.mxu3 %v58_v35 }
  0x15   :  { %142 = vmatpush.msra.mxu1 %v60_v37  ;;  %114 = vmatpush.msra.mxu0 %v55_v40 }
  0x16   :  { %173 = vmatpush.msra.mxu2 %v53_v38  ;;  %202 = vmatpush.msra.mxu3 %v54_v39 }
  0x17   :  { %143 = vmatpush.msra.mxu1 %v56_v41 }
  0x18   :  { %174 = vmatpush.msra.mxu2 %v49_v42  ;;  %203 = vmatpush.msra.mxu3 %v50_v44 }
  0x19   :  { %12 = vsyncpa [#allocation3], 0  ;;  %v41_v50 = vld [vmem:[%s1087_s1 + $0x50] sm:$0xff]  ;;  %115 = vmatpush.msra.mxu0 %v51_v46  ;;  %v42_v51 = vld [vmem:[%s1087_s1 + $0x58] sm:$0xff]  ;;  %144 = vmatpush.msra.mxu1 %v52_v47  ;;  %s538_s10 = sshll.u32 %s1093_s7, 4  ;;  %s595_s11 = smov 128   ;;  %s539_s10 = int_to_ptr.hbm [resolvable:$true] %s538_s10 }
  0x1a   :  { %175 = vmatpush.msra.mxu2 %v45_v43  ;;  %204 = vmatpush.msra.mxu3 %v46_v45  ;;  %v43_v52 = vld [vmem:[%s1087_s1 + $0x60] sm:$0xff]  ;;  %v44_v53 = vld [vmem:[%s1087_s1 + $0x68] sm:$0xff]  ;;  %v37_v54 = vld [vmem:[%s1087_s1 + $0x30] sm:$0xff]  ;;  %s596_s12 = smov 8  }
  0x1b   :  { %116 = vmatpush.msra.mxu0 %v47_v48  ;;  %v38_v55 = vld [vmem:[%s1087_s1 + $0x38] sm:$0xff]  ;;  %145 = vmatpush.msra.mxu1 %v48_v49  ;;  %v39_v56 = vld [vmem:[%s1087_s1 + $0x40] sm:$0xff]  ;;  %v40_v57 = vld [vmem:[%s1087_s1 + $0x48] sm:$0xff] }
  0x1c   :  { %176 = vmatpush.msra.mxu2 %v41_v50  ;;  %205 = vmatpush.msra.mxu3 %v42_v51  ;;  %v33_v58 = vld [vmem:[%s1087_s1 + $0x10] sm:$0xff]  ;;  %v34_v59 = vld [vmem:[%s1087_s1 + $0x18] sm:$0xff]  ;;  %v820_v60 = vld [vmem:[%s1086_s0] sm:$0xff] }
  0x1d   :  { %117 = vmatpush.msra.mxu0 %v43_v52  ;;  %146 = vmatpush.msra.mxu1 %v44_v53  ;;  %v35_v61 = vld [vmem:[%s1087_s1 + $0x20] sm:$0xff]  ;;  %v36_v62 = vld [vmem:[%s1087_s1 + $0x28] sm:$0xff]  ;;  %v284_v63 = vld [vmem:[%s1089_s3 + $0x178] sm:$0xff] }
  0x1e   :  { %177 = vmatpush.msra.mxu2 %v37_v54  ;;  %206 = vmatpush.msra.mxu3 %v38_v55  ;;  %v300_v0 = vld [vmem:[%s1089_s3 + $0x1f8] sm:$0xff]  ;;  %v31_v1 = vld [vmem:[%s1087_s1] sm:$0xff]  ;;  %v32_v2 = vld [vmem:[%s1087_s1 + $0x8] sm:$0xff] }
  0x1f   :  { %118 = vmatpush.msra.mxu0 %v39_v56  ;;  %147 = vmatpush.msra.mxu1 %v40_v57  ;;  %v252_v3 = vld [vmem:[%s1089_s3 + $0x78] sm:$0xff]  ;;  %v283_v4 = vld [vmem:[%s1089_s3 + $0x170] sm:$0xff]  ;;  %v282_v8 = vld [vmem:[%s1089_s3 + $0x168] sm:$0xff] }
  0x20   :  { %178 = vmatpush.msra.mxu2 %v33_v58  ;;  %207 = vmatpush.msra.mxu3 %v34_v59  ;;  %v268_v5 = vld [vmem:[%s1089_s3 + $0xf8] sm:$0xff]  ;;  %v299_v6 = vld [vmem:[%s1089_s3 + $0x1f0] sm:$0xff]  ;;  %v865_v9 = vld [vmem:[%s1086_s0 + $0x8] sm:$0xff] }
  0x21   :  { %179 = vmatmul.f32.vlgmr.msra.gmra.mxu2 %v820_v60  ;;  %208 = vmatmul.f32.vlgmr.msra.gmra.mxu3 %v820_v60  ;;  %v251_v7 = vld [vmem:[%s1089_s3 + $0x70] sm:$0xff]  ;;  %v250_v10 = vld [vmem:[%s1089_s3 + $0x68] sm:$0xff]  ;;  %v281_v12 = vld [vmem:[%s1089_s3 + $0x160] sm:$0xff] }
  0x22   :  { %119 = vmatpush.msra.mxu0 %v35_v61  ;;  %148 = vmatpush.msra.mxu1 %v36_v62  ;;  %v267_v11 = vld [vmem:[%s1089_s3 + $0xf0] sm:$0xff]  ;;  %v298_v13 = vld [vmem:[%s1089_s3 + $0x1e8] sm:$0xff]  ;;  %v249_v14 = vld [vmem:[%s1089_s3 + $0x60] sm:$0xff] }
  0x23   :  { %363 = vmatpush.msrb.mxu2 %v284_v63  ;;  %392 = vmatpush.msrb.mxu3 %v300_v0  ;;  %v266_v15 = vld [vmem:[%s1089_s3 + $0xe8] sm:$0xff]  ;;  %v280_v16 = vld [vmem:[%s1089_s3 + $0x158] sm:$0xff]  ;;  %v297_v17 = vld [vmem:[%s1089_s3 + $0x1e0] sm:$0xff] }
  0x24   :  { %120 = vmatpush.msra.mxu0 %v31_v1  ;;  %149 = vmatpush.msra.mxu1 %v32_v2  ;;  %v248_v18 = vld [vmem:[%s1089_s3 + $0x58] sm:$0xff]  ;;  %v265_v19 = vld [vmem:[%s1089_s3 + $0xe0] sm:$0xff]  ;;  %v279_v20 = vld [vmem:[%s1089_s3 + $0x150] sm:$0xff] }
  0x25   :  { %121 = vmatmul.f32.vlgmr.msra.gmra.mxu0 %v820_v60  ;;  %150 = vmatmul.f32.vlgmr.msra.gmra.mxu1 %v820_v60  ;;  %v296_v21 = vld [vmem:[%s1089_s3 + $0x1d8] sm:$0xff]  ;;  %v910_v22 = vld [vmem:[%s1086_s0 + $0x10] sm:$0xff]  ;;  %v278_v25 = vld [vmem:[%s1089_s3 + $0x148] sm:$0xff] }
  0x26   :  { %305 = vmatpush.msrb.mxu0 %v252_v3  ;;  %364 = vmatpush.msrb.mxu2 %v283_v4  ;;  %v247_v23 = vld [vmem:[%s1089_s3 + $0x50] sm:$0xff]  ;;  %v264_v24 = vld [vmem:[%s1089_s3 + $0xd8] sm:$0xff]  ;;  %v246_v27 = vld [vmem:[%s1089_s3 + $0x48] sm:$0xff] }
  0x27   :  { %334 = vmatpush.msrb.mxu1 %v268_v5  ;;  %393 = vmatpush.msrb.mxu3 %v299_v6  ;;  %v295_v26 = vld [vmem:[%s1089_s3 + $0x1d0] sm:$0xff]  ;;  %v277_v29 = vld [vmem:[%s1089_s3 + $0x140] sm:$0xff]  ;;  %v294_v30 = vld [vmem:[%s1089_s3 + $0x1c8] sm:$0xff] }
  0x28   :  { %306 = vmatpush.msrb.mxu0 %v251_v7  ;;  %365 = vmatpush.msrb.mxu2 %v282_v8  ;;  %v263_v28 = vld [vmem:[%s1089_s3 + $0xd0] sm:$0xff]  ;;  %v245_v31 = vld [vmem:[%s1089_s3 + $0x40] sm:$0xff]  ;;  %v262_v32 = vld [vmem:[%s1089_s3 + $0xc8] sm:$0xff] }
  0x29   :  { %182 = vmatmul.f32.gmra.mxu2 %v865_v9  ;;  %211 = vmatmul.f32.gmra.mxu3 %v865_v9  ;;  %v276_v33 = vld [vmem:[%s1089_s3 + $0x138] sm:$0xff]  ;;  %v293_v34 = vld [vmem:[%s1089_s3 + $0x1c0] sm:$0xff]  ;;  %v275_v38 = vld [vmem:[%s1089_s3 + $0x130] sm:$0xff] }
  0x2a   :  { %307 = vmatpush.msrb.mxu0 %v250_v10  ;;  %335 = vmatpush.msrb.mxu1 %v267_v11  ;;  %v955_v35 = vld [vmem:[%s1086_s0 + $0x18] sm:$0xff]  ;;  %v261_v37 = vld [vmem:[%s1089_s3 + $0xc0] sm:$0xff]  ;;  %v243_v40 = vld [vmem:[%s1089_s3 + $0x30] sm:$0xff] }
  0x2b   :  { %366 = vmatpush.msrb.mxu2 %v281_v12  ;;  %394 = vmatpush.msrb.mxu3 %v298_v13  ;;  %v244_v36 = vld [vmem:[%s1089_s3 + $0x38] sm:$0xff]  ;;  %v274_v42 = vld [vmem:[%s1089_s3 + $0x128] sm:$0xff]  ;;  %v291_v43 = vld [vmem:[%s1089_s3 + $0x1b0] sm:$0xff] }
  0x2c   :  { %308 = vmatpush.msrb.mxu0 %v249_v14  ;;  %336 = vmatpush.msrb.mxu1 %v266_v15  ;;  %v292_v39 = vld [vmem:[%s1089_s3 + $0x1b8] sm:$0xff]  ;;  %v242_v44 = vld [vmem:[%s1089_s3 + $0x28] sm:$0xff]  ;;  %v259_v45 = vld [vmem:[%s1089_s3 + $0xb0] sm:$0xff] }
  0x2d   :  { %124 = vmatmul.f32.gmra.mxu0 %v865_v9  ;;  %153 = vmatmul.f32.gmra.mxu1 %v865_v9  ;;  %v260_v41 = vld [vmem:[%s1089_s3 + $0xb8] sm:$0xff]  ;;  %v273_v46 = vld [vmem:[%s1089_s3 + $0x120] sm:$0xff]  ;;  %v290_v47 = vld [vmem:[%s1089_s3 + $0x1a8] sm:$0xff] }
  0x2e   :  { %367 = vmatpush.msrb.mxu2 %v280_v16  ;;  %395 = vmatpush.msrb.mxu3 %v297_v17  ;;  %v241_v48 = vld [vmem:[%s1089_s3 + $0x20] sm:$0xff]  ;;  %v258_v49 = vld [vmem:[%s1089_s3 + $0xa8] sm:$0xff]  ;;  %v272_v50 = vld [vmem:[%s1089_s3 + $0x118] sm:$0xff] }
  0x2f   :  { %309 = vmatpush.msrb.mxu0 %v248_v18  ;;  %337 = vmatpush.msrb.mxu1 %v265_v19  ;;  %v289_v51 = vld [vmem:[%s1089_s3 + $0x1a0] sm:$0xff]  ;;  %v240_v52 = vld [vmem:[%s1089_s3 + $0x18] sm:$0xff]  ;;  %v271_v54 = vld [vmem:[%s1089_s3 + $0x110] sm:$0xff] }
  0x30   :  { %368 = vmatpush.msrb.mxu2 %v279_v20  ;;  %396 = vmatpush.msrb.mxu3 %v296_v21  ;;  %v257_v53 = vld [vmem:[%s1089_s3 + $0xa0] sm:$0xff]  ;;  %v288_v55 = vld [vmem:[%s1089_s3 + $0x198] sm:$0xff]  ;;  %v239_v56 = vld [vmem:[%s1089_s3 + $0x10] sm:$0xff] }
  0x31   :  { %185 = vmatmul.f32.gmra.mxu2 %v910_v22  ;;  %214 = vmatmul.f32.gmra.mxu3 %v910_v22  ;;  %v256_v57 = vld [vmem:[%s1089_s3 + $0x98] sm:$0xff]  ;;  %v270_v58 = vld [vmem:[%s1089_s3 + $0x108] sm:$0xff]  ;;  %v287_v59 = vld [vmem:[%s1089_s3 + $0x190] sm:$0xff] }
  0x32   :  { %310 = vmatpush.msrb.mxu0 %v247_v23  ;;  %338 = vmatpush.msrb.mxu1 %v264_v24  ;;  %v238_v61 = vld [vmem:[%s1089_s3 + $0x8] sm:$0xff]  ;;  %v255_v62 = vld [vmem:[%s1089_s3 + $0x90] sm:$0xff]  ;;  %v269_v63 = vld [vmem:[%s1089_s3 + $0x100] sm:$0xff] }
  0x33   :  { %369 = vmatpush.msrb.mxu2 %v278_v25  ;;  %397 = vmatpush.msrb.mxu3 %v295_v26  ;;  %v286_v0 = vld [vmem:[%s1089_s3 + $0x188] sm:$0xff]  ;;  %v237_v1 = vld [vmem:[%s1089_s3] sm:$0xff] }
  0x34   :  { %311 = vmatpush.msrb.mxu0 %v246_v27  ;;  %339 = vmatpush.msrb.mxu1 %v263_v28  ;;  %v254_v2 = vld [vmem:[%s1089_s3 + $0x88] sm:$0xff]  ;;  %v285_v3 = vld [vmem:[%s1089_s3 + $0x180] sm:$0xff] }
  0x35   :  { %127 = vmatmul.f32.gmra.mxu0 %v910_v22  ;;  %156 = vmatmul.f32.gmra.mxu1 %v910_v22  ;;  %v253_v4 = vld [vmem:[%s1089_s3 + $0x80] sm:$0xff] }
  0x36   :  { %370 = vmatpush.msrb.mxu2 %v277_v29  ;;  %398 = vmatpush.msrb.mxu3 %v294_v30  ;;  %v95_v5 = vld [vmem:[%s1088_s2] sm:$0xf] }
  0x37   :  { %312 = vmatpush.msrb.mxu0 %v245_v31  ;;  %340 = vmatpush.msrb.mxu1 %v262_v32  ;;  %v97_v6 = vperm.slane %v95_v5, 0  ;;  %v98_v7 = vperm.slane %v95_v5, 1  ;;  %v99_v8 = vperm.slane %v95_v5, 2  ;;  %v100_v10 = vperm.slane %v95_v5, 3 }
  0x38   :  { %371 = vmatpush.msrb.mxu2 %v276_v33  ;;  %399 = vmatpush.msrb.mxu3 %v293_v34 }
  0x39   :  { %188 = vmatmul.f32.gmra.mxu2 %v955_v35  ;;  %217 = vmatmul.f32.gmra.mxu3 %v955_v35 }
  0x3a   :  { %313 = vmatpush.msrb.mxu0 %v244_v36  ;;  %341 = vmatpush.msrb.mxu1 %v261_v37 }
  0x3b   :  { %372 = vmatpush.msrb.mxu2 %v275_v38  ;;  %400 = vmatpush.msrb.mxu3 %v292_v39 }
  0x3c   :  { %314 = vmatpush.msrb.mxu0 %v243_v40  ;;  %342 = vmatpush.msrb.mxu1 %v260_v41 }
  0x3d   :  { %130 = vmatmul.f32.gmra.mxu0 %v955_v35  ;;  %159 = vmatmul.f32.gmra.mxu1 %v955_v35 }
  0x3e   :  { %373 = vmatpush.msrb.mxu2 %v274_v42  ;;  %401 = vmatpush.msrb.mxu3 %v291_v43 }
  0x3f   :  { %315 = vmatpush.msrb.mxu0 %v242_v44  ;;  %343 = vmatpush.msrb.mxu1 %v259_v45 }
  0x40   :  { %374 = vmatpush.msrb.mxu2 %v273_v46  ;;  %402 = vmatpush.msrb.mxu3 %v290_v47 }
  0x41   :  { %316 = vmatpush.msrb.mxu0 %v241_v48  ;;  %344 = vmatpush.msrb.mxu1 %v258_v49 }
  0x42   :  { %375 = vmatpush.msrb.mxu2 %v272_v50  ;;  %403 = vmatpush.msrb.mxu3 %v289_v51 }
  0x43   :  { %317 = vmatpush.msrb.mxu0 %v240_v52  ;;  %345 = vmatpush.msrb.mxu1 %v257_v53 }
  0x44   :  { %376 = vmatpush.msrb.mxu2 %v271_v54  ;;  %404 = vmatpush.msrb.mxu3 %v288_v55 }
  0x45   :  { %318 = vmatpush.msrb.mxu0 %v239_v56  ;;  %346 = vmatpush.msrb.mxu1 %v256_v57 }
  0x46   :  { %377 = vmatpush.msrb.mxu2 %v270_v58  ;;  %405 = vmatpush.msrb.mxu3 %v287_v59 }
  0x47   :  { %319 = vmatpush.msrb.mxu0 %v238_v61  ;;  %347 = vmatpush.msrb.mxu1 %v255_v62  ;;  %v554_v62 = vld [vmem:[%s1090_s4] ss:$0 sm:$0xff] }
  0x48   :  { %378 = vmatpush.msrb.mxu2 %v269_v63  ;;  %406 = vmatpush.msrb.mxu3 %v286_v0 }
  0x49   :  { %320 = vmatpush.msrb.mxu0 %v237_v1  ;;  %348 = vmatpush.msrb.mxu1 %v254_v2 }
  0x4a   :  { %407 = vmatpush.msrb.mxu3 %v285_v3 }
  0x4b   :  { %349 = vmatpush.msrb.mxu1 %v253_v4 }
  0xa2   :  { %v122_v11 = vpop.f32.mrf.mxu0  ;;  %v151_v12 = vpop.f32.mrf.mxu1 }
  0xa3   :  { %v123_v13 = vadd.f32 %v122_v11, %v97_v6  ;;  %v152_v14 = vadd.f32 %v151_v12, %v98_v7 }
  0xa4   :  { %v180_v15 = vpop.f32.mrf.mxu2  ;;  %v209_v16 = vpop.f32.mrf.mxu3 }
  0xa5   :  { %v181_v17 = vadd.f32 %v180_v15, %v99_v8  ;;  %v221_v18 = vmax.f32 %v123_v13, 0.0  ;;  %v210_v19 = vadd.f32 %v209_v16, %v100_v10  ;;  %v222_v20 = vmax.f32 %v152_v14, 0.0 }
  0xa7   :  { %v223_v21 = vmax.f32 %v181_v17, 0.0  ;;  %v224_v23 = vmax.f32 %v210_v19, 0.0  ;;  %321 = vmatmul.f32.vlgmr.msrb.gmra.mxu0 %v221_v18  ;;  %350 = vmatmul.f32.vlgmr.msrb.gmra.mxu1 %v222_v20 }
  0xa9   :  { %379 = vmatmul.f32.vlgmr.msrb.gmra.mxu2 %v223_v21  ;;  %408 = vmatmul.f32.vlgmr.msrb.gmra.mxu3 %v224_v23 }
  0xaa   :  { %v125_v24 = vpop.f32.mrf.mxu0  ;;  %v154_v25 = vpop.f32.mrf.mxu1 }
  0xab   :  { %v126_v26 = vadd.f32 %v125_v24, %v97_v6  ;;  %v155_v27 = vadd.f32 %v154_v25, %v98_v7 }
  0xac   :  { %v183_v28 = vpop.f32.mrf.mxu2  ;;  %v212_v29 = vpop.f32.mrf.mxu3 }
  0xad   :  { %v184_v30 = vadd.f32 %v183_v28, %v99_v8  ;;  %v225_v31 = vmax.f32 %v126_v26, 0.0  ;;  %v213_v32 = vadd.f32 %v212_v29, %v100_v10  ;;  %v226_v33 = vmax.f32 %v155_v27, 0.0 }
  0xaf   :  { %v227_v34 = vmax.f32 %v184_v30, 0.0  ;;  %v228_v36 = vmax.f32 %v213_v32, 0.0  ;;  %324 = vmatmul.f32.gmra.mxu0 %v225_v31  ;;  %353 = vmatmul.f32.gmra.mxu1 %v226_v33 }
  0xb1   :  { %382 = vmatmul.f32.gmra.mxu2 %v227_v34  ;;  %411 = vmatmul.f32.gmra.mxu3 %v228_v36 }
  0xb2   :  { %v128_v37 = vpop.f32.mrf.mxu0  ;;  %v157_v38 = vpop.f32.mrf.mxu1 }
  0xb3   :  { %v129_v39 = vadd.f32 %v128_v37, %v97_v6  ;;  %v158_v40 = vadd.f32 %v157_v38, %v98_v7 }
  0xb4   :  { %v186_v41 = vpop.f32.mrf.mxu2  ;;  %v215_v42 = vpop.f32.mrf.mxu3 }
  0xb5   :  { %v187_v43 = vadd.f32 %v186_v41, %v99_v8  ;;  %v229_v44 = vmax.f32 %v129_v39, 0.0  ;;  %v216_v45 = vadd.f32 %v215_v42, %v100_v10  ;;  %v230_v46 = vmax.f32 %v158_v40, 0.0 }
  0xb7   :  { %v231_v47 = vmax.f32 %v187_v43, 0.0  ;;  %v232_v48 = vmax.f32 %v216_v45, 0.0  ;;  %327 = vmatmul.f32.gmra.mxu0 %v229_v44  ;;  %356 = vmatmul.f32.gmra.mxu1 %v230_v46 }
  0xb9   :  { %385 = vmatmul.f32.gmra.mxu2 %v231_v47  ;;  %414 = vmatmul.f32.gmra.mxu3 %v232_v48 }
  0xba   :  { %v131_v49 = vpop.f32.mrf.mxu0  ;;  %v160_v50 = vpop.f32.mrf.mxu1 }
  0xbb   :  { %v132_v51 = vadd.f32 %v131_v49, %v97_v6  ;;  %v161_v52 = vadd.f32 %v160_v50, %v98_v7 }
  0xbc   :  { %v189_v53 = vpop.f32.mrf.mxu2  ;;  %v218_v54 = vpop.f32.mrf.mxu3 }
  0xbd   :  { %v190_v55 = vadd.f32 %v189_v53, %v99_v8  ;;  %v233_v56 = vmax.f32 %v132_v51, 0.0  ;;  %v219_v57 = vadd.f32 %v218_v54, %v100_v10  ;;  %v234_v58 = vmax.f32 %v161_v52, 0.0 }
  0xbf   :  { %v235_v59 = vmax.f32 %v190_v55, 0.0  ;;  %v236_v61 = vmax.f32 %v219_v57, 0.0  ;;  %330 = vmatmul.f32.gmra.mxu0 %v233_v56  ;;  %359 = vmatmul.f32.gmra.mxu1 %v234_v58 }
  0xc1   :  { %388 = vmatmul.f32.gmra.mxu2 %v235_v59  ;;  %417 = vmatmul.f32.gmra.mxu3 %v236_v61 }
 0x124   :  { %v322_v63 = vpop.f32.mrf.mxu0  ;;  %v351_v0 = vpop.f32.mrf.mxu1 }
 0x125   :  { %v323_v1 = vadd.f32 %v554_v62, %v322_v63 }
 0x127   :  { %v352_v2 = vadd.f32 %v351_v0, %v323_v1 }
 0x12c   :  { %v380_v3 = vpop.f32.mrf.mxu2  ;;  %v409_v4 = vpop.f32.mrf.mxu3 }
 0x12d   :  { %v381_v5 = vadd.f32 %v380_v3, %v352_v2  ;;  %v325_v6 = vpop.f32.mrf.mxu0  ;;  %v354_v7 = vpop.f32.mrf.mxu1 }
 0x12e   :  { %v326_v8 = vadd.f32 %v554_v62, %v325_v6 }
 0x12f   :  { %v410_v10 = vadd.f32 %v409_v4, %v381_v5 }
 0x130   :  { %v355_v11 = vadd.f32 %v354_v7, %v326_v8 }
 0x131   :  { %v421_v12 = vadd.f32 %v410_v10, %v820_v60 }
 0x133   :  { %425 = vadd.xlane.f32.xlu0 %v421_v12 }
 0x134   :  { %v383_v13 = vpop.f32.mrf.mxu2  ;;  %v412_v14 = vpop.f32.mrf.mxu3 }
 0x135   :  { %v384_v15 = vadd.f32 %v383_v13, %v355_v11  ;;  %v328_v16 = vpop.f32.mrf.mxu0  ;;  %v357_v17 = vpop.f32.mrf.mxu1 }
 0x136   :  { %v329_v18 = vadd.f32 %v554_v62, %v328_v16 }
 0x137   :  { %v413_v19 = vadd.f32 %v412_v14, %v384_v15  ;;  %v556_v15 = vld [vmem:[%s1092_s6] ss:$0 sm:$0xff] }
 0x138   :  { %v358_v20 = vadd.f32 %v357_v17, %v329_v18 }
 0x139   :  { %v422_v21 = vadd.f32 %v413_v19, %v865_v9  ;;  %v593_v9 = vmov 128.0  }
 0x13a   :  { %557 = vrcp.f32 %v593_v9 }
 0x13b   :  { %427 = vadd.xlane.f32.xlu0 %v422_v21 }
 0x13c   :  { %v386_v23 = vpop.f32.mrf.mxu2  ;;  %v415_v24 = vpop.f32.mrf.mxu3 }
 0x13d   :  { %v387_v25 = vadd.f32 %v386_v23, %v358_v20  ;;  %v331_v26 = vpop.f32.mrf.mxu0  ;;  %v360_v28 = vpop.f32.mrf.mxu1 }
 0x13e   :  { %v332_v27 = vadd.f32 %v554_v62, %v331_v26 }
 0x13f   :  { %v416_v29 = vadd.f32 %v415_v24, %v387_v25 }
 0x140   :  { %v361_v60 = vadd.f32 %v360_v28, %v332_v27  ;;  %v558_v37 = vpop.eup %557 }
 0x141   :  { %v423_v30 = vadd.f32 %v416_v29, %v910_v22  ;;  %v434_v38 = vmul.f32 128.0, %v558_v37  ;;  %vm438_vm0 = vweird.f32 %v558_v37 }
 0x143   :  { %429 = vadd.xlane.f32.xlu1 %v423_v30  ;;  %v435_v39 = vsub.f32 1.0, %v434_v38 }
 0x144   :  { %v389_v31 = vpop.f32.mrf.mxu2  ;;  %v418_v32 = vpop.f32.mrf.mxu3 }
 0x145   :  { %v390_v33 = vadd.f32 %v389_v31, %v361_v60  ;;  %v436_v40 = vmul.f32 %v558_v37, %v435_v39 }
 0x147   :  { %v419_v34 = vadd.f32 %v418_v32, %v390_v33  ;;  %v437_v41 = vadd.f32 %v558_v37, %v436_v40 }
 0x149   :  { %v424_v36 = vadd.f32 %v419_v34, %v955_v35  ;;  %v439_v42 = vsel %vm438_vm0, %v558_v37, %v437_v41 }
 0x14b   :  { %431 = vadd.xlane.f32.xlu1 %v424_v36 }
 0x1a6   :  { %v426_v43 = vpop.xlane.xlu0 %425 }
 0x1a7   :  { %v440_v44 = vmul.f32 %v439_v42, %v426_v43 }
 0x1a9   :  { %v444_v22 = vsub.f32 %v421_v12, %v440_v44  ;;  %v555_v12 = vld [vmem:[%s1091_s5] ss:$0 sm:$0xff]  ;;  %s594_s5 = smov [#allocation2]  }
 0x1aa   :  { %s536_s6 = sshll.u32 %s594_s5, 4  ;;  %s537_s6 = int_to_ptr.vmem [resolvable:$true] %s536_s6 }
 0x1ab   :  { %v448_v45 = vmul.f32 %v444_v22, %v444_v22 }
 0x1ad   :  { %452 = vadd.xlane.f32.xlu2 %v448_v45 }
 0x1ae   :  { %v428_v46 = vpop.xlane.xlu0 %427 }
 0x1af   :  { %v441_v47 = vmul.f32 %v439_v42, %v428_v46 }
 0x1b1   :  { %v445_v48 = vsub.f32 %v422_v21, %v441_v47 }
 0x1b3   :  { %v449_v49 = vmul.f32 %v445_v48, %v445_v48 }
 0x1b5   :  { %454 = vadd.xlane.f32.xlu2 %v449_v49 }
 0x1b6   :  { %v430_v35 = vpop.xlane.xlu1 %429 }
 0x1b7   :  { %v442_v50 = vmul.f32 %v439_v42, %v430_v35 }
 0x1b9   :  { %v1067_v51 = vsub.f32 %v423_v30, %v442_v50 }
 0x1bb   :  { %v450_v52 = vmul.f32 %v1067_v51, %v1067_v51 }
 0x1bd   :  { %456 = vadd.xlane.f32.xlu0 %v450_v52 }
 0x1be   :  { %v432_v53 = vpop.xlane.xlu1 %431 }
 0x1bf   :  { %v443_v54 = vmul.f32 %v439_v42, %v432_v53 }
 0x1c1   :  { %v1071_v55 = vsub.f32 %v424_v36, %v443_v54 }
 0x1c3   :  { %v451_v56 = vmul.f32 %v1071_v55, %v1071_v55 }
 0x1c5   :  { %458 = vadd.xlane.f32.xlu1 %v451_v56 }
 0x220   :  { %v453_v57 = vpop.xlane.xlu2 %452 }
 0x221   :  { %v460_v58 = vmul.f32 %v453_v57, %v439_v42 }
 0x223   :  { %v464_v59 = vadd.f32 1e-05, %v460_v58 }
 0x225   :  { %559 = vrsqrt.f32 %v464_v59  ;;  %vm474_vm2 = vweird.f32 %v464_v59 }
 0x228   :  { %v455_v61 = vpop.xlane.xlu2 %454 }
 0x229   :  { %v461_v62 = vmul.f32 %v455_v61, %v439_v42 }
 0x22b   :  { %v560_v63 = vpop.eup %559  ;;  %v465_v0 = vadd.f32 1e-05, %v461_v62 }
 0x22c   :  { %v469_v1 = vmul.f32 %v560_v63, %v464_v59  ;;  %vm475_vm1 = vweird.f32 %v560_v63 }
 0x22d   :  { %561 = vrsqrt.f32 %v465_v0  ;;  %vm476_vm3 = vmor %vm474_vm2, %vm475_vm1  ;;  %vm484_vm5 = vweird.f32 %v465_v0 }
 0x22e   :  { %v470_v2 = vmul.f32 %v560_v63, %v469_v1 }
 0x230   :  { %v471_v3 = vmul.f32 0.5, %v470_v2  ;;  %v457_v4 = vpop.xlane.xlu0 %456 }
 0x231   :  { %v462_v5 = vmul.f32 %v457_v4, %v439_v42 }
 0x232   :  { %v472_v6 = vsub.f32 1.5, %v471_v3 }
 0x233   :  { %v562_v7 = vpop.eup %561  ;;  %v466_v8 = vadd.f32 1e-05, %v462_v5 }
 0x234   :  { %v473_v10 = vmul.f32 %v560_v63, %v472_v6  ;;  %v479_v11 = vmul.f32 %v562_v7, %v465_v0  ;;  %vm485_vm4 = vweird.f32 %v562_v7 }
 0x235   :  { %563 = vrsqrt.f32 %v466_v8  ;;  %vm486_vm6 = vmor %vm484_vm5, %vm485_vm4  ;;  %vm494_vm8 = vweird.f32 %v466_v8 }
 0x236   :  { %v477_v13 = vsel %vm476_vm3, %v560_v63, %v473_v10  ;;  %v480_v14 = vmul.f32 %v562_v7, %v479_v11 }
 0x237   :  { %v508_v16 = vmul.f32 %v477_v13, %v444_v22 }
 0x238   :  { %v481_v17 = vmul.f32 0.5, %v480_v14  ;;  %v459_v18 = vpop.xlane.xlu1 %458 }
 0x239   :  { %v516_v19 = vmul.f32 %v555_v12, %v508_v16  ;;  %v463_v20 = vmul.f32 %v459_v18, %v439_v42 }
 0x23a   :  { %v482_v21 = vsub.f32 1.5, %v481_v17 }
 0x23b   :  { %v564_v23 = vpop.eup %563  ;;  %v524_v24 = vadd.f32 %v556_v15, %v516_v19  ;;  %v467_v25 = vadd.f32 1e-05, %v463_v20 }
 0x23c   :  { %v483_v26 = vmul.f32 %v562_v7, %v482_v21  ;;  %v489_v27 = vmul.f32 %v564_v23, %v466_v8  ;;  %vm495_vm7 = vweird.f32 %v564_v23 }
 0x23d   :  { %528 = vst [vmem:[#allocation2] sm:$0xff] %v524_v24  ;;  %565 = vrsqrt.f32 %v467_v25  ;;  %vm496_vm9 = vmor %vm494_vm8, %vm495_vm7  ;;  %vm504_vm11 = vweird.f32 %v467_v25 }
 0x23e   :  { %v487_v28 = vsel %vm486_vm6, %v562_v7, %v483_v26  ;;  %v490_v29 = vmul.f32 %v564_v23, %v489_v27 }
 0x23f   :  { %v509_v60 = vmul.f32 %v487_v28, %v445_v48 }
 0x240   :  { %v491_v30 = vmul.f32 0.5, %v490_v29 }
 0x241   :  { %v517_v31 = vmul.f32 %v555_v12, %v509_v60 }
 0x242   :  { %v492_v32 = vsub.f32 1.5, %v491_v30 }
 0x243   :  { %v566_v33 = vpop.eup %565  ;;  %v525_v34 = vadd.f32 %v556_v15, %v517_v31 }
 0x244   :  { %v493_v36 = vmul.f32 %v564_v23, %v492_v32  ;;  %v499_v9 = vmul.f32 %v566_v33, %v467_v25  ;;  %vm505_vm10 = vweird.f32 %v566_v33 }
 0x245   :  { %529 = vst [vmem:[#allocation2 + $0x8] sm:$0xff] %v525_v34  ;;  %vm506_vm12 = vmor %vm504_vm11, %vm505_vm10 }
 0x246   :  { %v497_v37 = vsel %vm496_vm9, %v564_v23, %v493_v36  ;;  %v500_v38 = vmul.f32 %v566_v33, %v499_v9 }
 0x247   :  { %v510_v39 = vmul.f32 %v497_v37, %v1067_v51 }
 0x248   :  { %v501_v40 = vmul.f32 0.5, %v500_v38 }
 0x249   :  { %v518_v41 = vmul.f32 %v555_v12, %v510_v39 }
 0x24a   :  { %v502_v42 = vsub.f32 1.5, %v501_v40 }
 0x24b   :  { %v526_v43 = vadd.f32 %v556_v15, %v518_v41 }
 0x24c   :  { %v503_v44 = vmul.f32 %v566_v33, %v502_v42 }
 0x24d   :  { %530 = vst [vmem:[#allocation2 + $0x10] sm:$0xff] %v526_v43 }
 0x24e   :  { %v507_v22 = vsel %vm506_vm12, %v566_v33, %v503_v44 }
 0x24f   :  { %v511_v45 = vmul.f32 %v507_v22, %v1071_v55 }
 0x251   :  { %v519_v46 = vmul.f32 %v555_v12, %v511_v45 }
 0x253   :  { %v527_v47 = vadd.f32 %v556_v15, %v519_v46 }
 0x255   :  { %531 = vst [vmem:[#allocation2 + $0x18] sm:$0xff] %v527_v47 }
 0x256   :  { %544 = dma.vmem_to_hbm [thread:$0]  %s537_s6, 512, %s539_s10, [#allocation3], %s595_s11, %s595_s11, %s596_s12  }
 0x257   :  { %591 = dma.done.wait [#allocation3], 512  }
 0x258   :  { %592 = vsyncadd [#allocation3], 4294966784 }
 0x259   :  { %549 = vsyncpa [#allocation3], 1 }

</bundles_post_ra>
